<compile_context>
chip_gen: v6e
topology: v6e:2x2x1
jax: 0.10.0
libtpu: 0.0.40
codegen_flags: <defaults>
</compile_context>

<pallas_src>
import functools
import math

import jax
import jax.numpy as jnp
from jax import lax
from jax.experimental import pallas as pl
from jax.experimental.pallas import tpu as pltpu


class Args:
    dim = 32
    n_layers = 2
    n_heads = 4
    n_kv_heads = 2
    vocab_size = 64
    multiple_of = 32
    ffn_dim_multiplier = None
    norm_eps = 1e-5
    max_batch_size = 2
    max_seq_len = 8
    rope_theta = 10000.0


def ffn_hidden_dim(args):
    hidden = 4 * args.dim
    hidden = int(2 * hidden / 3)
    if args.ffn_dim_multiplier is not None:
        hidden = int(args.ffn_dim_multiplier * hidden)
    return args.multiple_of * ((hidden + args.multiple_of - 1) // args.multiple_of)


def precompute_rope_tables(head_dim, seq_len, theta=10000.0):
    assert head_dim % 2 == 0
    tnum = jnp.arange(0, head_dim, 2, dtype=jnp.float32)
    inv = 1.0 / (theta ** (tnum / head_dim))
    m = jnp.arange(seq_len, dtype=jnp.float32)
    freqs = jnp.outer(m, inv)                    # (seq_len, head_dim // 2)
    return jnp.cos(freqs), jnp.sin(freqs)


def _deinterleave_perm(head_dim, n_heads):
    """Per-head column permutation: interleaved (r0,i0,r1,i1,...) -> [evens | odds]."""
    per_head = jnp.concatenate(
        [jnp.arange(0, head_dim, 2), jnp.arange(1, head_dim, 2)])
    return jnp.concatenate([h * head_dim + per_head for h in range(n_heads)])


def prepare_params(params, args):
    """One-time offline re-layout of wq/wk columns so in-kernel RoPE needs no permute."""
    D, Hq, nkv = args.dim, args.n_heads, args.n_kv_heads
    Dh = D // Hq
    q_w, kv_w = Hq * Dh, nkv * Dh
    perm_q = _deinterleave_perm(Dh, Hq)
    perm_k = _deinterleave_perm(Dh, nkv)
    wqkv = params["wqkv"]
    q = wqkv[:, :, :q_w][:, :, perm_q]
    k = wqkv[:, :, q_w:q_w + kv_w][:, :, perm_k]
    v = wqkv[:, :, q_w + kv_w:]
    out = dict(params)
    out["wqkv"] = jnp.concatenate([q, k, v], axis=-1)
    return out


# --------------------------- fused per-layer kernel --------------------------- #

def _decode_layer_kernel(
    # scalar prefetch
    sp_ref,
    # inputs
    h0_ref, cos_ref, sin_ref, mask_ref,
    attn_nw_ref, ffn_nw_ref,
    wqkv_ref, wo_ref, w13_ref, w2_ref,
    ck_ref, cv_ref,
    # outputs
    h_out_ref, ck_new_ref, cv_new_ref,
    *, n_heads, n_kv_heads, head_dim, eps,
):
    layer = pl.program_id(0)
    q_w = n_heads * head_dim
    kv_w = n_kv_heads * head_dim
    n_rep = n_heads // n_kv_heads
    half = head_dim // 2
    t_max = ck_ref.shape[0]
    batch = ck_ref.shape[1]
    tb = t_max * batch
    scale = 1.0 / math.sqrt(head_dim)

    def rmsnorm(x, w):
        ms = jnp.mean(x * x, axis=-1, keepdims=True)
        return (x * jax.lax.rsqrt(ms + eps)) * w

    def mxu(x, w_ref):
        # bf16 weights + bf16 activations, f32 accumulation on the MXU.
        return jnp.dot(x.astype(jnp.bfloat16), w_ref[...],
                       preferred_element_type=jnp.float32)

    @pl.when(layer == 0)
    def _():
        h_out_ref[...] = h0_ref[...]

    h = h_out_ref[...]                                         # (B, D) residual stream

    # ------------------------------ attention ------------------------------ #
    xn = rmsnorm(h, attn_nw_ref[...])
    qkv = mxu(xn, wqkv_ref)                                    # (B, q_w + 2*kv_w) f32
    xq3 = qkv[:, :q_w].reshape(batch, n_heads, head_dim)
    xk3 = qkv[:, q_w:q_w + kv_w].reshape(batch, n_kv_heads, head_dim)
    xv = qkv[:, q_w + kv_w:]                                   # (B, kv_w)

    # RoPE on cos/sin rows (weights were pre-permuted to per-head [evens|odds]).
    cos = cos_ref[...].reshape(1, 1, half)
    sin = sin_ref[...].reshape(1, 1, half)

    def rope(x3):
        lo = x3[..., :half]
        hi = x3[..., half:]
        return jnp.concatenate([lo * cos - hi * sin, hi * cos + lo * sin], axis=-1)

    xq3 = rope(xq3) * scale                                    # fold 1/sqrt(Dh) into Q
    xk3 = rope(xk3)
    xk_flat = xk3.reshape(batch, kv_w)

    # O(1) KV-cache writeback: only the start_pos row leaves VMEM (aliased outputs).
    ck_new_ref[...] = xk_flat.astype(jnp.bfloat16)[None]
    cv_new_ref[...] = xv.astype(jnp.bfloat16)[None]

    # Flatten (Tmax, B) so scores/PV are plain 2-D MXU dots; cross-batch and
    # out-of-prefix columns are removed by the additive mask.
    kc2 = ck_ref[...].reshape(tb, kv_w)                        # bf16
    vc2 = cv_ref[...].reshape(tb, kv_w)
    amask = mask_ref[...][:, None, :]                          # (B, 1, Tmax*B)

    head_slabs = []
    for g in range(n_kv_heads):                                # small KV-group loop
        q_g3 = xq3[:, g * n_rep:(g + 1) * n_rep, :]            # (B, R, Dh) f32
        q_g2 = q_g3.reshape(batch * n_rep, head_dim).astype(jnp.bfloat16)
        k_g = kc2[:, g * head_dim:(g + 1) * head_dim]          # (Tmax*B, Dh) bf16
        v_g = vc2[:, g * head_dim:(g + 1) * head_dim]

        s = lax.dot_general(q_g2, k_g, (((1,), (1,)), ((), ())),
                            preferred_element_type=jnp.float32)
        s = s.reshape(batch, n_rep, tb) + amask                # strict mask: pos < start_pos

        # current token folded in as one extra in-register column / PV term
        k_cur = xk3[:, g, :]                                   # (B, Dh)
        v_cur = xv[:, g * head_dim:(g + 1) * head_dim]         # (B, Dh)
        s_cur = jnp.sum(q_g3 * k_cur[:, None, :], axis=-1, keepdims=True)  # (B, R, 1)

        m = jnp.maximum(jnp.max(s, axis=-1, keepdims=True), s_cur)
        e = jnp.exp(s - m)
        e_cur = jnp.exp(s_cur - m)
        denom = jnp.sum(e, axis=-1, keepdims=True) + e_cur

        pv = lax.dot_general(e.reshape(batch * n_rep, tb).astype(jnp.bfloat16),
                             v_g, (((1,), (0,)), ((), ())),
                             preferred_element_type=jnp.float32)            # (B*R, Dh)
        out_g = (pv.reshape(batch, n_rep, head_dim) + e_cur * v_cur[:, None, :]) \
            * pl.reciprocal(denom, approx=True)
        head_slabs.append(out_g.reshape(batch, n_rep * head_dim))

    attn = head_slabs[0] if len(head_slabs) == 1 else jnp.concatenate(head_slabs, -1)

    h = h + mxu(attn, wo_ref)

    # --------------------------- feed-forward (SwiGLU) --------------------------- #
    hidden = w2_ref.shape[0]
    fn = rmsnorm(h, ffn_nw_ref[...])
    g13 = mxu(fn, w13_ref)                                     # fused w1 | w3
    a = g13[:, :hidden]
    b = g13[:, hidden:]
    h = h + mxu((a * jax.nn.sigmoid(a)) * b, w2_ref)

    h_out_ref[...] = h


# ---------------------- final norm + vocab projection kernel ------------------ #

def _final_head_kernel(h_ref, nw_ref, ow_ref, logits_ref, *, eps):
    h = h_ref[...]
    ms = jnp.mean(h * h, axis=-1, keepdims=True)
    hn = (h * jax.lax.rsqrt(ms + eps)) * nw_ref[...]
    logits_ref[...] = jnp.dot(hn.astype(jnp.bfloat16), ow_ref[...],
                              preferred_element_type=jnp.float32)


# --------------------------------- wrapper ---------------------------------- #

def make_forward(args):
    D = args.dim
    Hq = args.n_heads
    nkv = args.n_kv_heads
    Dh = D // Hq
    half = Dh // 2
    q_w = Hq * Dh
    kv_w = nkv * Dh
    qkv_w = q_w + 2 * kv_w
    hidden = ffn_hidden_dim(args)
    V = args.vocab_size
    L = args.n_layers
    Tmax = args.max_seq_len
    B = args.max_batch_size

    cos_all, sin_all = precompute_rope_tables(Dh, args.max_seq_len * 2, args.rope_theta)

    layer_kernel = functools.partial(
        _decode_layer_kernel,
        n_heads=Hq, n_kv_heads=nkv, head_dim=Dh, eps=args.norm_eps)

    grid_spec = pltpu.PrefetchScalarGridSpec(
        num_scalar_prefetch=1,
        grid=(L,),
        in_specs=[
            pl.BlockSpec((B, D), lambda l, sp: (0, 0)),                       # h0
            pl.BlockSpec((1, half), lambda l, sp: (0, 0)),                    # cos row
            pl.BlockSpec((1, half), lambda l, sp: (0, 0)),                    # sin row
            pl.BlockSpec((B, Tmax * B), lambda l, sp: (0, 0)),                # additive mask
            pl.BlockSpec((None, 1, D), lambda l, sp: (l, 0, 0)),              # attn norm w
            pl.BlockSpec((None, 1, D), lambda l, sp: (l, 0, 0)),              # ffn norm w
            pl.BlockSpec((None, D, qkv_w), lambda l, sp: (l, 0, 0)),          # wqkv (bf16)
            pl.BlockSpec((None, q_w, D), lambda l, sp: (l, 0, 0)),            # wo (bf16)
            pl.BlockSpec((None, D, 2 * hidden), lambda l, sp: (l, 0, 0)),     # w1|w3 (bf16)
            pl.BlockSpec((None, hidden, D), lambda l, sp: (l, 0, 0)),         # w2 (bf16)
            pl.BlockSpec((None, Tmax, B, kv_w), lambda l, sp: (l, 0, 0, 0)),  # cache_k
            pl.BlockSpec((None, Tmax, B, kv_w), lambda l, sp: (l, 0, 0, 0)),  # cache_v
        ],
        out_specs=[
            pl.BlockSpec((B, D), lambda l, sp: (0, 0)),                       # final residual
            pl.BlockSpec((None, 1, B, kv_w), lambda l, sp: (l, sp[0], 0, 0)), # new K row
            pl.BlockSpec((None, 1, B, kv_w), lambda l, sp: (l, sp[0], 0, 0)), # new V row
        ],
    )

    layer_call = pl.pallas_call(
        layer_kernel,
        grid_spec=grid_spec,
        out_shape=(
            jax.ShapeDtypeStruct((B, D), jnp.float32),
            jax.ShapeDtypeStruct((L, Tmax, B, kv_w), jnp.bfloat16),
            jax.ShapeDtypeStruct((L, Tmax, B, kv_w), jnp.bfloat16),
        ),
        # operand indices include the scalar-prefetch arg: 11 = cache_k, 12 = cache_v
        input_output_aliases={11: 1, 12: 2},
        compiler_params=pltpu.CompilerParams(
            dimension_semantics=("arbitrary",),   # layers are sequential (residual carry)
            vmem_limit_bytes=32 * 1024 * 1024),   # TODO(synk): re-derive at production dims
    )

    final_call = pl.pallas_call(
        functools.partial(_final_head_kernel, eps=args.norm_eps),
        grid=(1,),
        in_specs=[
            pl.BlockSpec((B, D), lambda i: (0, 0)),
            pl.BlockSpec((1, D), lambda i: (0, 0)),
            pl.BlockSpec((D, V), lambda i: (0, 0)),   # TODO(synk): tile V at real vocab sizes
        ],
        out_specs=pl.BlockSpec((B, V), lambda i: (0, 0)),
        out_shape=jax.ShapeDtypeStruct((B, V), jnp.float32),
    )

    def forward(tokens, start_pos, params, cache_k, cache_v):
        Bt, S = tokens.shape
        assert S == 1, "Only one token at a time can be processed during inference!"
        assert Bt == B

        # clamp start_pos so the cache-row writeback index can never go OOB
        sp = jnp.clip(jnp.asarray(start_pos, jnp.int32), 0, Tmax - 1)

        cos = cos_all[sp].reshape(1, half)
        sin = sin_all[sp].reshape(1, half)

        # additive mask over the (Tmax*B)-flattened cache: same batch AND pos < start_pos
        tcol = jnp.repeat(jnp.arange(Tmax, dtype=jnp.int32), B)
        bcol = jnp.tile(jnp.arange(B, dtype=jnp.int32), Tmax)
        valid = (bcol[None, :] == jnp.arange(B, dtype=jnp.int32)[:, None]) & \
                (tcol[None, :] < sp)
        mask = jnp.where(valid, 0.0, -1e30).astype(jnp.float32)   # (B, Tmax*B)

        h0 = params["tok_emb"][tokens[:, 0]]                      # (B, D) embedding gather

        h_final, new_ck, new_cv = layer_call(
            jnp.reshape(sp, (1,)),
            h0, cos, sin, mask,
            params["attn_norm"], params["ffn_norm"],
            params["wqkv"], params["wo"], params["w13"], params["w2"],
            cache_k, cache_v,
        )

        logits = final_call(h_final, params["final_norm"], params["out_w"])
        return logits.reshape(B, 1, V), new_ck, new_cv

    return forward


# ----------------------------- params / reference ---------------------------- #

def init_state(key, args):
    D, Hq, nkv = args.dim, args.n_heads, args.n_kv_heads
    Dh = D // Hq
    q_w, kv_w = Hq * Dh, nkv * Dh
    hidden = ffn_hidden_dim(args)
    L, V = args.n_layers, args.vocab_size
    Tmax, B = args.max_seq_len, args.max_batch_size

    ks = jax.random.split(key, 6)

    def nrm(k, shape):
        return 0.02 * jax.random.normal(k, shape, dtype=jnp.float32)

    params = {
        "tok_emb": nrm(ks[0], (V, D)),
        "attn_norm": jnp.ones((L, 1, D), jnp.float32),
        "ffn_norm": jnp.ones((L, 1, D), jnp.float32),
        "wqkv": nrm(ks[1], (L, D, q_w + 2 * kv_w)).astype(jnp.bfloat16),
        "wo": nrm(ks[2], (L, q_w, D)).astype(jnp.bfloat16),
        "w13": nrm(ks[3], (L, D, 2 * hidden)).astype(jnp.bfloat16),
        "w2": nrm(ks[4], (L, hidden, D)).astype(jnp.bfloat16),
        "final_norm": jnp.ones((1, D), jnp.float32),
        "out_w": nrm(ks[5], (D, V)).astype(jnp.bfloat16),
    }
    cache_k = jnp.zeros((L, Tmax, B, kv_w), jnp.bfloat16)
    cache_v = jnp.zeros((L, Tmax, B, kv_w), jnp.bfloat16)
    return params, cache_k, cache_v


def reference_forward(tokens, start_pos, params, args):
    """Plain-JAX f32 mirror of the PyTorch Transformer (single-token decode)."""
    B, _ = tokens.shape
    D, Hq, nkv = args.dim, args.n_heads, args.n_kv_heads
    Dh = D // Hq
    n_rep = Hq // nkv
    q_w, kv_w = Hq * Dh, nkv * Dh
    hidden = ffn_hidden_dim(args)
    eps = args.norm_eps

    cos_all, sin_all = precompute_rope_tables(Dh, args.max_seq_len * 2, args.rope_theta)
    cos, sin = cos_all[start_pos], sin_all[start_pos]

    def rms(x, w):
        return w * (x * jax.lax.rsqrt(jnp.mean(x * x, -1, keepdims=True) + eps))

    def rope(x):  # (B, H, Dh), interleaved complex pairs as in the PyTorch module
        xr = x.reshape(x.shape[0], x.shape[1], -1, 2)
        x0, x1 = xr[..., 0], xr[..., 1]
        o0 = x0 * cos - x1 * sin
        o1 = x0 * sin + x1 * cos
        return jnp.stack([o0, o1], axis=-1).reshape(x.shape)

    h = params["tok_emb"][tokens[:, 0]]
    new_k_rows, new_v_rows = [], []
    for l in range(args.n_layers):
        wqkv = params["wqkv"][l].astype(jnp.float32)
        wo = params["wo"][l].astype(jnp.float32)
        w13 = params["w13"][l].astype(jnp.float32)
        w2 = params["w2"][l].astype(jnp.float32)

        xn = rms(h, params["attn_norm"][l, 0])
        qkv = xn @ wqkv
        xq = rope(qkv[:, :q_w].reshape(B, Hq, Dh))
        xk = rope(qkv[:, q_w:q_w + kv_w].reshape(B, nkv, Dh))
        xv = qkv[:, q_w + kv_w:].reshape(B, nkv, Dh)
        new_k_rows.append(xk.reshape(B, kv_w))
        new_v_rows.append(xv.reshape(B, kv_w))

        T = start_pos + 1
        keys = jnp.zeros((B, T, nkv, Dh), jnp.float32).at[:, start_pos].set(xk)
        vals = jnp.zeros((B, T, nkv, Dh), jnp.float32).at[:, start_pos].set(xv)
        keys = jnp.repeat(keys, n_rep, axis=2)
        vals = jnp.repeat(vals, n_rep, axis=2)

        scores = jnp.einsum("bhd,bthd->bht", xq, keys) / math.sqrt(Dh)
        p = jax.nn.softmax(scores, axis=-1)
        attn = jnp.einsum("bht,bthd->bhd", p, vals).reshape(B, q_w)
        h = h + attn @ wo

        fn = rms(h, params["ffn_norm"][l, 0])
        g13 = fn @ w13
        a, bgate = g13[:, :hidden], g13[:, hidden:]
        h = h + ((a * jax.nn.sigmoid(a)) * bgate) @ w2

    hn = rms(h, params["final_norm"][0])
    logits = hn @ params["out_w"].astype(jnp.float32)
    return logits.reshape(B, 1, -1), new_k_rows, new_v_rows


# ----------------------------------- main ------------------------------------ #

if __name__ == "__main__":
    args = Args()
    key = jax.random.PRNGKey(0)
    k_params, k_tok = jax.random.split(key)

    params, cache_k, cache_v = init_state(k_params, args)
    kparams = prepare_params(params, args)     # one-time wq/wk column re-layout for RoPE
    tokens = jax.random.randint(k_tok, (args.max_batch_size, 1), 0, args.vocab_size,
                                dtype=jnp.int32)
    start_pos = 3  # cache rows 0..2 stay zero, matching the PyTorch module's behaviour

    forward = jax.jit(make_forward(args), donate_argnums=(3, 4))
    logits, cache_k, cache_v = forward(
        tokens, jnp.array(start_pos, dtype=jnp.int32), kparams, cache_k, cache_v)
    logits = jax.block_until_ready(logits)

    assert logits.shape == (args.max_batch_size, 1, args.vocab_size)
    assert logits.dtype == jnp.float32
    assert bool(jnp.all(jnp.isfinite(logits)))

    # Numerics check against a plain-JAX f32 reference (bf16 weights upcast identically;
    # tolerance covers bf16 activation/cache casts + approx reciprocal).
    ref_logits, ref_k_rows, ref_v_rows = reference_forward(tokens, start_pos, params, args)
    scale = float(jnp.max(jnp.abs(ref_logits))) + 1e-6
    max_err = float(jnp.max(jnp.abs(logits - ref_logits)))
    assert max_err <= 0.08 * scale + 1e-3, (max_err, scale)

    Dh = args.dim // args.n_heads
    perm_k = _deinterleave_perm(Dh, args.n_kv_heads)   # kernel stores K de-interleaved
    untouched = jnp.array([t for t in range(args.max_seq_len) if t != start_pos])
    for l in range(args.n_layers):
        got_k = cache_k[l, start_pos].astype(jnp.float32)
        got_v = cache_v[l, start_pos].astype(jnp.float32)
        want_k = ref_k_rows[l][:, perm_k]
        want_v = ref_v_rows[l]
        assert float(jnp.max(jnp.abs(got_k - want_k))) < 2e-2
        assert float(jnp.max(jnp.abs(got_v - want_v))) < 2e-2
        assert float(jnp.max(jnp.abs(cache_k[l][untouched].astype(jnp.float32)))) < 1e-6
        assert float(jnp.max(jnp.abs(cache_v[l][untouched].astype(jnp.float32)))) < 1e-6

    print("KERNEL_OK")
</pallas_src>

<mosaic_0001>
module attributes {stable_mosaic.version = 11 : i64} {
  func.func @_final_head_kernel(%arg0: i32, %arg1: memref<2x32xf32, #tpu.memory_space<vmem>>, %arg2: memref<1x32xf32, #tpu.memory_space<vmem>>, %arg3: memref<32x64xbf16, #tpu.memory_space<vmem>>, %arg4: memref<2x64xf32, #tpu.memory_space<vmem>>) attributes {dimension_semantics = [#tpu.dimension_semantics<arbitrary>], iteration_bounds = array<i64: 1>, scalar_prefetch = 0 : i64, scratch_operands = 0 : i64, tpu.core_type = #tpu.core_type<tc>, window_params = [{pipeline_mode = #tpu.pipeline_mode<synchronous>, transform_indices = @transform_0, window_bounds = array<i64: 2, 32>}, {pipeline_mode = #tpu.pipeline_mode<synchronous>, transform_indices = @transform_1, window_bounds = array<i64: 1, 32>}, {pipeline_mode = #tpu.pipeline_mode<synchronous>, transform_indices = @transform_2, window_bounds = array<i64: 32, 64>}, {pipeline_mode = #tpu.pipeline_mode<synchronous>, transform_indices = @transform_3, window_bounds = array<i64: 2, 64>}]} {
    %c0 = arith.constant 0 : index
    %c0_0 = arith.constant 0 : index
    %0 = vector.load %arg1[%c0, %c0_0] : memref<2x32xf32, #tpu.memory_space<vmem>>, vector<2x32xf32>
    %1 = arith.mulf %0, %0 : vector<2x32xf32>
    %cst = arith.constant dense<0.000000e+00> : vector<2xf32>
    %2 = vector.multi_reduction <add>, %1, %cst [1] : vector<2x32xf32> to vector<2xf32>
    %3 = vector.shape_cast %2 : vector<2xf32> to vector<2x1xf32>
    %cst_1 = arith.constant 3.200000e+01 : f32
    %4 = vector.broadcast %cst_1 : f32 to vector<2x1xf32>
    %5 = arith.divf %3, %4 : vector<2x1xf32>
    %cst_2 = arith.constant 9.99999974E-6 : f32
    %6 = vector.broadcast %cst_2 : f32 to vector<2x1xf32>
    %7 = arith.addf %5, %6 : vector<2x1xf32>
    %8 = math.rsqrt %7 : vector<2x1xf32>
    %9 = vector.broadcast %8 : vector<2x1xf32> to vector<2x32xf32>
    %10 = arith.mulf %0, %9 : vector<2x32xf32>
    %c0_3 = arith.constant 0 : index
    %c0_4 = arith.constant 0 : index
    %11 = vector.load %arg2[%c0_3, %c0_4] : memref<1x32xf32, #tpu.memory_space<vmem>>, vector<1x32xf32>
    %12 = vector.broadcast %11 : vector<1x32xf32> to vector<2x32xf32>
    %13 = arith.mulf %10, %12 : vector<2x32xf32>
    %14 = arith.truncf %13 : vector<2x32xf32> to vector<2x32xbf16>
    %c0_5 = arith.constant 0 : index
    %c0_6 = arith.constant 0 : index
    %15 = vector.load %arg3[%c0_5, %c0_6] : memref<32x64xbf16, #tpu.memory_space<vmem>>, vector<32x64xbf16>
    %cst_7 = arith.constant dense<0.000000e+00> : vector<2x64xf32>
    %16 = tpu.matmul %14, %15, %cst_7 {dimension_numbers = #tpu.dot_dimension_numbers<[1], [0], [0], [1], [0, 0, 1, 1], [], []>} : vector<2x32xbf16>, vector<32x64xbf16>, vector<2x64xf32> -> vector<2x64xf32>
    %c0_8 = arith.constant 0 : index
    %c0_9 = arith.constant 0 : index
    %17 = vector.load %arg4[%c0_8, %c0_9] : memref<2x64xf32, #tpu.memory_space<vmem>>, vector<2x64xf32>
    tpu.vector_store %arg4[%c0_8, %c0_9], %16 {strides = array<i32>} : memref<2x64xf32, #tpu.memory_space<vmem>>, vector<2x64xf32>,
    return
  }
  func.func @transform_0(%arg0: i32) -> (i32, i32) {
    %c0_i32 = arith.constant 0 : i32
    %c0_i32_0 = arith.constant 0 : i32
    %c0_i32_1 = arith.constant 0 : i32
    return %c0_i32, %c0_i32_0 : i32, i32
  }
  func.func @transform_1(%arg0: i32) -> (i32, i32) {
    %c0_i32 = arith.constant 0 : i32
    %c0_i32_0 = arith.constant 0 : i32
    %c0_i32_1 = arith.constant 0 : i32
    return %c0_i32, %c0_i32_0 : i32, i32
  }
  func.func @transform_2(%arg0: i32) -> (i32, i32) {
    %c0_i32 = arith.constant 0 : i32
    %c0_i32_0 = arith.constant 0 : i32
    %c0_i32_1 = arith.constant 0 : i32
    return %c0_i32, %c0_i32_0 : i32, i32
  }
  func.func @transform_3(%arg0: i32) -> (i32, i32) {
    %c0_i32 = arith.constant 0 : i32
    %c0_i32_0 = arith.constant 0 : i32
    %c0_i32_1 = arith.constant 0 : i32
    return %c0_i32, %c0_i32_0 : i32, i32
  }
}

module attributes {stable_mosaic.version = 11 : i64} {
  func.func @_decode_layer_kernel(%arg0: i32, %arg1: memref<1xi32, #tpu.memory_space<smem>>, %arg2: memref<2x32xf32, #tpu.memory_space<vmem>>, %arg3: memref<1x4xf32, #tpu.memory_space<vmem>>, %arg4: memref<1x4xf32, #tpu.memory_space<vmem>>, %arg5: memref<2x16xf32, #tpu.memory_space<vmem>>, %arg6: memref<1x1x32xf32, #tpu.memory_space<vmem>>, %arg7: memref<1x1x32xf32, #tpu.memory_space<vmem>>, %arg8: memref<1x32x64xbf16, #tpu.memory_space<vmem>>, %arg9: memref<1x32x32xbf16, #tpu.memory_space<vmem>>, %arg10: memref<1x32x192xbf16, #tpu.memory_space<vmem>>, %arg11: memref<1x96x32xbf16, #tpu.memory_space<vmem>>, %arg12: memref<1x8x2x16xbf16, #tpu.memory_space<vmem>>, %arg13: memref<1x8x2x16xbf16, #tpu.memory_space<vmem>>, %arg14: memref<2x32xf32, #tpu.memory_space<vmem>>, %arg15: memref<1x1x2x16xbf16, #tpu.memory_space<vmem>>, %arg16: memref<1x1x2x16xbf16, #tpu.memory_space<vmem>>) attributes {dimension_semantics = [#tpu.dimension_semantics<arbitrary>], iteration_bounds = array<i64: 2>, scalar_prefetch = 1 : i64, scratch_operands = 0 : i64, tpu.core_type = #tpu.core_type<tc>, window_params = [{pipeline_mode = #tpu.pipeline_mode<synchronous>, transform_indices = @transform_0, window_bounds = array<i64: 2, 32>}, {pipeline_mode = #tpu.pipeline_mode<synchronous>, transform_indices = @transform_1, window_bounds = array<i64: 1, 4>}, {pipeline_mode = #tpu.pipeline_mode<synchronous>, transform_indices = @transform_2, window_bounds = array<i64: 1, 4>}, {pipeline_mode = #tpu.pipeline_mode<synchronous>, transform_indices = @transform_3, window_bounds = array<i64: 2, 16>}, {transform_indices = @transform_4, window_bounds = array<i64: 1, 1, 32>}, {transform_indices = @transform_5, window_bounds = array<i64: 1, 1, 32>}, {transform_indices = @transform_6, window_bounds = array<i64: 1, 32, 64>}, {transform_indices = @transform_7, window_bounds = array<i64: 1, 32, 32>}, {transform_indices = @transform_8, window_bounds = array<i64: 1, 32, 192>}, {transform_indices = @transform_9, window_bounds = array<i64: 1, 96, 32>}, {transform_indices = @transform_10, window_bounds = array<i64: 1, 8, 2, 16>}, {transform_indices = @transform_11, window_bounds = array<i64: 1, 8, 2, 16>}, {pipeline_mode = #tpu.pipeline_mode<synchronous>, transform_indices = @transform_12, window_bounds = array<i64: 2, 32>}, {transform_indices = @transform_13, window_bounds = array<i64: 1, 1, 2, 16>}, {transform_indices = @transform_14, window_bounds = array<i64: 1, 1, 2, 16>}]} {
    %c0_i32 = arith.constant 0 : i32
    %0 = arith.cmpi eq, %arg0, %c0_i32 : i32
    %1 = arith.extui %0 : i1 to i32
    %c0_i32_0 = arith.constant 0 : i32
    %2 = arith.cmpi ne, %1, %c0_i32_0 : i32
    scf.if %2 {
      %c0_65 = arith.constant 0 : index
      %c0_66 = arith.constant 0 : index
      %199 = vector.load %arg2[%c0_65, %c0_66] : memref<2x32xf32, #tpu.memory_space<vmem>>, vector<2x32xf32>
      %c0_67 = arith.constant 0 : index
      %c0_68 = arith.constant 0 : index
      %200 = vector.load %arg14[%c0_67, %c0_68] : memref<2x32xf32, #tpu.memory_space<vmem>>, vector<2x32xf32>
      tpu.vector_store %arg14[%c0_67, %c0_68], %199 {strides = array<i32>} : memref<2x32xf32, #tpu.memory_space<vmem>>, vector<2x32xf32>,
    } else {
    }
    %c0 = arith.constant 0 : index
    %c0_1 = arith.constant 0 : index
    %3 = vector.load %arg14[%c0, %c0_1] : memref<2x32xf32, #tpu.memory_space<vmem>>, vector<2x32xf32>
    %c0_2 = arith.constant 0 : index
    %c0_3 = arith.constant 0 : index
    %c0_4 = arith.constant 0 : index
    %4 = vector.load %arg6[%c0_2, %c0_3, %c0_4] : memref<1x1x32xf32, #tpu.memory_space<vmem>>, vector<1x1x32xf32>
    %5 = vector.shape_cast %4 : vector<1x1x32xf32> to vector<1x32xf32>
    %6 = arith.mulf %3, %3 : vector<2x32xf32>
    %cst = arith.constant dense<0.000000e+00> : vector<2xf32>
    %7 = vector.multi_reduction <add>, %6, %cst [1] : vector<2x32xf32> to vector<2xf32>
    %8 = vector.shape_cast %7 : vector<2xf32> to vector<2x1xf32>
    %cst_5 = arith.constant 3.200000e+01 : f32
    %9 = vector.broadcast %cst_5 : f32 to vector<2x1xf32>
    %10 = arith.divf %8, %9 : vector<2x1xf32>
    %cst_6 = arith.constant 9.99999974E-6 : f32
    %11 = vector.broadcast %cst_6 : f32 to vector<2x1xf32>
    %12 = arith.addf %10, %11 : vector<2x1xf32>
    %13 = math.rsqrt %12 : vector<2x1xf32>
    %14 = vector.broadcast %13 : vector<2x1xf32> to vector<2x32xf32>
    %15 = arith.mulf %3, %14 : vector<2x32xf32>
    %16 = vector.broadcast %5 : vector<1x32xf32> to vector<2x32xf32>
    %17 = arith.mulf %15, %16 : vector<2x32xf32>
    %18 = arith.truncf %17 : vector<2x32xf32> to vector<2x32xbf16>
    %c0_7 = arith.constant 0 : index
    %c0_8 = arith.constant 0 : index
    %c0_9 = arith.constant 0 : index
    %19 = vector.load %arg8[%c0_7, %c0_8, %c0_9] : memref<1x32x64xbf16, #tpu.memory_space<vmem>>, vector<1x32x64xbf16>
    %20 = vector.shape_cast %19 : vector<1x32x64xbf16> to vector<32x64xbf16>
    %cst_10 = arith.constant dense<0.000000e+00> : vector<2x64xf32>
    %21 = tpu.matmul %18, %20, %cst_10 {dimension_numbers = #tpu.dot_dimension_numbers<[1], [0], [0], [1], [0, 0, 1, 1], [], []>} : vector<2x32xbf16>, vector<32x64xbf16>, vector<2x64xf32> -> vector<2x64xf32>
    %22 = vector.extract_strided_slice %21 {offsets = [0, 0], sizes = [2, 32], strides = [1, 1]} : vector<2x64xf32> to vector<2x32xf32>
    %23 = vector.shape_cast %22 : vector<2x32xf32> to vector<2x4x8xf32>
    %24 = vector.extract_strided_slice %21 {offsets = [0, 32], sizes = [2, 16], strides = [1, 1]} : vector<2x64xf32> to vector<2x16xf32>
    %25 = vector.shape_cast %24 : vector<2x16xf32> to vector<2x2x8xf32>
    %26 = vector.extract_strided_slice %21 {offsets = [0, 48], sizes = [2, 16], strides = [1, 1]} : vector<2x64xf32> to vector<2x16xf32>
    %c0_11 = arith.constant 0 : index
    %c0_12 = arith.constant 0 : index
    %27 = vector.load %arg3[%c0_11, %c0_12] : memref<1x4xf32, #tpu.memory_space<vmem>>, vector<1x4xf32>
    %28 = vector.shape_cast %27 : vector<1x4xf32> to vector<1x1x4xf32>
    %c0_13 = arith.constant 0 : index
    %c0_14 = arith.constant 0 : index
    %29 = vector.load %arg4[%c0_13, %c0_14] : memref<1x4xf32, #tpu.memory_space<vmem>>, vector<1x4xf32>
    %30 = vector.shape_cast %29 : vector<1x4xf32> to vector<1x1x4xf32>
    %31 = vector.extract_strided_slice %23 {offsets = [0, 0, 0], sizes = [2, 4, 4], strides = [1, 1, 1]} : vector<2x4x8xf32> to vector<2x4x4xf32>
    %32 = vector.extract_strided_slice %23 {offsets = [0, 0, 4], sizes = [2, 4, 4], strides = [1, 1, 1]} : vector<2x4x8xf32> to vector<2x4x4xf32>
    %33 = vector.broadcast %28 : vector<1x1x4xf32> to vector<2x4x4xf32>
    %34 = arith.mulf %31, %33 : vector<2x4x4xf32>
    %35 = vector.broadcast %30 : vector<1x1x4xf32> to vector<2x4x4xf32>
    %36 = arith.mulf %32, %35 : vector<2x4x4xf32>
    %37 = arith.subf %34, %36 : vector<2x4x4xf32>
    %38 = vector.broadcast %28 : vector<1x1x4xf32> to vector<2x4x4xf32>
    %39 = arith.mulf %32, %38 : vector<2x4x4xf32>
    %40 = vector.broadcast %30 : vector<1x1x4xf32> to vector<2x4x4xf32>
    %41 = arith.mulf %31, %40 : vector<2x4x4xf32>
    %42 = arith.addf %39, %41 : vector<2x4x4xf32>
    %43 = tpu.concatenate %37, %42 in 2 : vector<2x4x4xf32>, vector<2x4x4xf32> -> vector<2x4x8xf32>
    %cst_15 = arith.constant 0.353553385 : f32
    %44 = vector.broadcast %cst_15 : f32 to vector<2x4x8xf32>
    %45 = arith.mulf %43, %44 : vector<2x4x8xf32>
    %46 = vector.extract_strided_slice %25 {offsets = [0, 0, 0], sizes = [2, 2, 4], strides = [1, 1, 1]} : vector<2x2x8xf32> to vector<2x2x4xf32>
    %47 = vector.extract_strided_slice %25 {offsets = [0, 0, 4], sizes = [2, 2, 4], strides = [1, 1, 1]} : vector<2x2x8xf32> to vector<2x2x4xf32>
    %48 = vector.broadcast %28 : vector<1x1x4xf32> to vector<2x2x4xf32>
    %49 = arith.mulf %46, %48 : vector<2x2x4xf32>
    %50 = vector.broadcast %30 : vector<1x1x4xf32> to vector<2x2x4xf32>
    %51 = arith.mulf %47, %50 : vector<2x2x4xf32>
    %52 = arith.subf %49, %51 : vector<2x2x4xf32>
    %53 = vector.broadcast %28 : vector<1x1x4xf32> to vector<2x2x4xf32>
    %54 = arith.mulf %47, %53 : vector<2x2x4xf32>
    %55 = vector.broadcast %30 : vector<1x1x4xf32> to vector<2x2x4xf32>
    %56 = arith.mulf %46, %55 : vector<2x2x4xf32>
    %57 = arith.addf %54, %56 : vector<2x2x4xf32>
    %58 = tpu.concatenate %52, %57 in 2 : vector<2x2x4xf32>, vector<2x2x4xf32> -> vector<2x2x8xf32>
    %59 = vector.shape_cast %58 : vector<2x2x8xf32> to vector<2x16xf32>
    %60 = arith.truncf %59 : vector<2x16xf32> to vector<2x16xbf16>
    %61 = vector.shape_cast %60 : vector<2x16xbf16> to vector<1x2x16xbf16>
    %c0_16 = arith.constant 0 : index
    %c0_17 = arith.constant 0 : index
    %c0_18 = arith.constant 0 : index
    %c0_19 = arith.constant 0 : index
    %62 = vector.load %arg15[%c0_16, %c0_17, %c0_18, %c0_19] : memref<1x1x2x16xbf16, #tpu.memory_space<vmem>>, vector<1x1x2x16xbf16>
    %63 = vector.shape_cast %62 : vector<1x1x2x16xbf16> to vector<1x2x16xbf16>
    %64 = vector.shape_cast %61 : vector<1x2x16xbf16> to vector<1x1x2x16xbf16>
    tpu.vector_store %arg15[%c0_16, %c0_17, %c0_18, %c0_19], %64 {strides = array<i32>} : memref<1x1x2x16xbf16, #tpu.memory_space<vmem>>, vector<1x1x2x16xbf16>,
    %65 = arith.truncf %26 : vector<2x16xf32> to vector<2x16xbf16>
    %66 = vector.shape_cast %65 : vector<2x16xbf16> to vector<1x2x16xbf16>
    %c0_20 = arith.constant 0 : index
    %c0_21 = arith.constant 0 : index
    %c0_22 = arith.constant 0 : index
    %c0_23 = arith.constant 0 : index
    %67 = vector.load %arg16[%c0_20, %c0_21, %c0_22, %c0_23] : memref<1x1x2x16xbf16, #tpu.memory_space<vmem>>, vector<1x1x2x16xbf16>
    %68 = vector.shape_cast %67 : vector<1x1x2x16xbf16> to vector<1x2x16xbf16>
    %69 = vector.shape_cast %66 : vector<1x2x16xbf16> to vector<1x1x2x16xbf16>
    tpu.vector_store %arg16[%c0_20, %c0_21, %c0_22, %c0_23], %69 {strides = array<i32>} : memref<1x1x2x16xbf16, #tpu.memory_space<vmem>>, vector<1x1x2x16xbf16>,
    %c0_24 = arith.constant 0 : index
    %c0_25 = arith.constant 0 : index
    %c0_26 = arith.constant 0 : index
    %c0_27 = arith.constant 0 : index
    %70 = vector.load %arg12[%c0_24, %c0_25, %c0_26, %c0_27] : memref<1x8x2x16xbf16, #tpu.memory_space<vmem>>, vector<1x8x2x16xbf16>
    %71 = vector.shape_cast %70 : vector<1x8x2x16xbf16> to vector<8x2x16xbf16>
    %72 = vector.shape_cast %71 : vector<8x2x16xbf16> to vector<16x16xbf16>
    %c0_28 = arith.constant 0 : index
    %c0_29 = arith.constant 0 : index
    %c0_30 = arith.constant 0 : index
    %c0_31 = arith.constant 0 : index
    %73 = vector.load %arg13[%c0_28, %c0_29, %c0_30, %c0_31] : memref<1x8x2x16xbf16, #tpu.memory_space<vmem>>, vector<1x8x2x16xbf16>
    %74 = vector.shape_cast %73 : vector<1x8x2x16xbf16> to vector<8x2x16xbf16>
    %75 = vector.shape_cast %74 : vector<8x2x16xbf16> to vector<16x16xbf16>
    %c0_32 = arith.constant 0 : index
    %c0_33 = arith.constant 0 : index
    %76 = vector.load %arg5[%c0_32, %c0_33] : memref<2x16xf32, #tpu.memory_space<vmem>>, vector<2x16xf32>
    %77 = vector.shape_cast %76 : vector<2x16xf32> to vector<2x1x16xf32>
    %78 = vector.extract_strided_slice %45 {offsets = [0, 0, 0], sizes = [2, 2, 8], strides = [1, 1, 1]} : vector<2x4x8xf32> to vector<2x2x8xf32>
    %79 = vector.shape_cast %78 : vector<2x2x8xf32> to vector<4x8xf32>
    %80 = arith.truncf %79 : vector<4x8xf32> to vector<4x8xbf16>
    %81 = vector.extract_strided_slice %72 {offsets = [0, 0], sizes = [16, 8], strides = [1, 1]} : vector<16x16xbf16> to vector<16x8xbf16>
    %82 = vector.extract_strided_slice %75 {offsets = [0, 0], sizes = [16, 8], strides = [1, 1]} : vector<16x16xbf16> to vector<16x8xbf16>
    %cst_34 = arith.constant dense<0.000000e+00> : vector<4x16xf32>
    %83 = tpu.matmul %80, %81, %cst_34 {dimension_numbers = #tpu.dot_dimension_numbers<[1], [1], [0], [0], [0, 0, 1, 0], [], []>} : vector<4x8xbf16>, vector<16x8xbf16>, vector<4x16xf32> -> vector<4x16xf32>
    %84 = vector.shape_cast %83 : vector<4x16xf32> to vector<2x2x16xf32>
    %85 = vector.broadcast %77 : vector<2x1x16xf32> to vector<2x2x16xf32>
    %86 = arith.addf %84, %85 : vector<2x2x16xf32>
    %87 = vector.extract_strided_slice %58 {offsets = [0, 0, 0], sizes = [2, 1, 8], strides = [1, 1, 1]} : vector<2x2x8xf32> to vector<2x1x8xf32>
    %88 = vector.shape_cast %87 : vector<2x1x8xf32> to vector<2x8xf32>
    %89 = vector.extract_strided_slice %26 {offsets = [0, 0], sizes = [2, 8], strides = [1, 1]} : vector<2x16xf32> to vector<2x8xf32>
    %90 = vector.shape_cast %88 : vector<2x8xf32> to vector<2x1x8xf32>
    %91 = vector.broadcast %90 : vector<2x1x8xf32> to vector<2x2x8xf32>
    %92 = arith.mulf %78, %91 : vector<2x2x8xf32>
    %cst_35 = arith.constant dense<0.000000e+00> : vector<2x2xf32>
    %93 = vector.multi_reduction <add>, %92, %cst_35 [2] : vector<2x2x8xf32> to vector<2x2xf32>
    %94 = vector.shape_cast %93 : vector<2x2xf32> to vector<2x2x1xf32>
    %cst_36 = arith.constant dense<0xFF800000> : vector<2x2xf32>
    %95 = vector.multi_reduction <maximumf>, %86, %cst_36 [2] : vector<2x2x16xf32> to vector<2x2xf32>
    %96 = vector.shape_cast %95 : vector<2x2xf32> to vector<2x2x1xf32>
    %97 = arith.maximumf %96, %94 : vector<2x2x1xf32>
    %98 = vector.broadcast %97 : vector<2x2x1xf32> to vector<2x2x16xf32>
    %99 = arith.subf %86, %98 : vector<2x2x16xf32>
    %100 = math.exp %99 : vector<2x2x16xf32>
    %101 = arith.subf %94, %97 : vector<2x2x1xf32>
    %102 = math.exp %101 : vector<2x2x1xf32>
    %cst_37 = arith.constant dense<0.000000e+00> : vector<2x2xf32>
    %103 = vector.multi_reduction <add>, %100, %cst_37 [2] : vector<2x2x16xf32> to vector<2x2xf32>
    %104 = vector.shape_cast %103 : vector<2x2xf32> to vector<2x2x1xf32>
    %105 = arith.addf %104, %102 : vector<2x2x1xf32>
    %106 = vector.shape_cast %100 : vector<2x2x16xf32> to vector<4x16xf32>
    %107 = arith.truncf %106 : vector<4x16xf32> to vector<4x16xbf16>
    %cst_38 = arith.constant dense<0.000000e+00> : vector<4x8xf32>
    %108 = tpu.matmul %107, %82, %cst_38 {dimension_numbers = #tpu.dot_dimension_numbers<[1], [0], [0], [1], [0, 0, 1, 1], [], []>} : vector<4x16xbf16>, vector<16x8xbf16>, vector<4x8xf32> -> vector<4x8xf32>
    %109 = vector.shape_cast %108 : vector<4x8xf32> to vector<2x2x8xf32>
    %110 = vector.shape_cast %89 : vector<2x8xf32> to vector<2x1x8xf32>
    %111 = vector.broadcast %102 : vector<2x2x1xf32> to vector<2x2x8xf32>
    %112 = vector.broadcast %110 : vector<2x1x8xf32> to vector<2x2x8xf32>
    %113 = arith.mulf %111, %112 : vector<2x2x8xf32>
    %114 = arith.addf %109, %113 : vector<2x2x8xf32>
    %115 = tpu.reciprocal %105 {approx = true} : vector<2x2x1xf32> -> vector<2x2x1xf32>
    %116 = vector.broadcast %115 : vector<2x2x1xf32> to vector<2x2x8xf32>
    %117 = arith.mulf %114, %116 : vector<2x2x8xf32>
    %118 = vector.shape_cast %117 : vector<2x2x8xf32> to vector<2x16xf32>
    %119 = vector.extract_strided_slice %45 {offsets = [0, 2, 0], sizes = [2, 2, 8], strides = [1, 1, 1]} : vector<2x4x8xf32> to vector<2x2x8xf32>
    %120 = vector.shape_cast %119 : vector<2x2x8xf32> to vector<4x8xf32>
    %121 = arith.truncf %120 : vector<4x8xf32> to vector<4x8xbf16>
    %122 = vector.extract_strided_slice %72 {offsets = [0, 8], sizes = [16, 8], strides = [1, 1]} : vector<16x16xbf16> to vector<16x8xbf16>
    %123 = vector.extract_strided_slice %75 {offsets = [0, 8], sizes = [16, 8], strides = [1, 1]} : vector<16x16xbf16> to vector<16x8xbf16>
    %cst_39 = arith.constant dense<0.000000e+00> : vector<4x16xf32>
    %124 = tpu.matmul %121, %122, %cst_39 {dimension_numbers = #tpu.dot_dimension_numbers<[1], [1], [0], [0], [0, 0, 1, 0], [], []>} : vector<4x8xbf16>, vector<16x8xbf16>, vector<4x16xf32> -> vector<4x16xf32>
    %125 = vector.shape_cast %124 : vector<4x16xf32> to vector<2x2x16xf32>
    %126 = vector.broadcast %77 : vector<2x1x16xf32> to vector<2x2x16xf32>
    %127 = arith.addf %125, %126 : vector<2x2x16xf32>
    %128 = vector.extract_strided_slice %58 {offsets = [0, 1, 0], sizes = [2, 1, 8], strides = [1, 1, 1]} : vector<2x2x8xf32> to vector<2x1x8xf32>
    %129 = vector.shape_cast %128 : vector<2x1x8xf32> to vector<2x8xf32>
    %130 = vector.extract_strided_slice %26 {offsets = [0, 8], sizes = [2, 8], strides = [1, 1]} : vector<2x16xf32> to vector<2x8xf32>
    %131 = vector.shape_cast %129 : vector<2x8xf32> to vector<2x1x8xf32>
    %132 = vector.broadcast %131 : vector<2x1x8xf32> to vector<2x2x8xf32>
    %133 = arith.mulf %119, %132 : vector<2x2x8xf32>
    %cst_40 = arith.constant dense<0.000000e+00> : vector<2x2xf32>
    %134 = vector.multi_reduction <add>, %133, %cst_40 [2] : vector<2x2x8xf32> to vector<2x2xf32>
    %135 = vector.shape_cast %134 : vector<2x2xf32> to vector<2x2x1xf32>
    %cst_41 = arith.constant dense<0xFF800000> : vector<2x2xf32>
    %136 = vector.multi_reduction <maximumf>, %127, %cst_41 [2] : vector<2x2x16xf32> to vector<2x2xf32>
    %137 = vector.shape_cast %136 : vector<2x2xf32> to vector<2x2x1xf32>
    %138 = arith.maximumf %137, %135 : vector<2x2x1xf32>
    %139 = vector.broadcast %138 : vector<2x2x1xf32> to vector<2x2x16xf32>
    %140 = arith.subf %127, %139 : vector<2x2x16xf32>
    %141 = math.exp %140 : vector<2x2x16xf32>
    %142 = arith.subf %135, %138 : vector<2x2x1xf32>
    %143 = math.exp %142 : vector<2x2x1xf32>
    %cst_42 = arith.constant dense<0.000000e+00> : vector<2x2xf32>
    %144 = vector.multi_reduction <add>, %141, %cst_42 [2] : vector<2x2x16xf32> to vector<2x2xf32>
    %145 = vector.shape_cast %144 : vector<2x2xf32> to vector<2x2x1xf32>
    %146 = arith.addf %145, %143 : vector<2x2x1xf32>
    %147 = vector.shape_cast %141 : vector<2x2x16xf32> to vector<4x16xf32>
    %148 = arith.truncf %147 : vector<4x16xf32> to vector<4x16xbf16>
    %cst_43 = arith.constant dense<0.000000e+00> : vector<4x8xf32>
    %149 = tpu.matmul %148, %123, %cst_43 {dimension_numbers = #tpu.dot_dimension_numbers<[1], [0], [0], [1], [0, 0, 1, 1], [], []>} : vector<4x16xbf16>, vector<16x8xbf16>, vector<4x8xf32> -> vector<4x8xf32>
    %150 = vector.shape_cast %149 : vector<4x8xf32> to vector<2x2x8xf32>
    %151 = vector.shape_cast %130 : vector<2x8xf32> to vector<2x1x8xf32>
    %152 = vector.broadcast %143 : vector<2x2x1xf32> to vector<2x2x8xf32>
    %153 = vector.broadcast %151 : vector<2x1x8xf32> to vector<2x2x8xf32>
    %154 = arith.mulf %152, %153 : vector<2x2x8xf32>
    %155 = arith.addf %150, %154 : vector<2x2x8xf32>
    %156 = tpu.reciprocal %146 {approx = true} : vector<2x2x1xf32> -> vector<2x2x1xf32>
    %157 = vector.broadcast %156 : vector<2x2x1xf32> to vector<2x2x8xf32>
    %158 = arith.mulf %155, %157 : vector<2x2x8xf32>
    %159 = vector.shape_cast %158 : vector<2x2x8xf32> to vector<2x16xf32>
    %160 = tpu.concatenate %118, %159 in 1 : vector<2x16xf32>, vector<2x16xf32> -> vector<2x32xf32>
    %161 = arith.truncf %160 : vector<2x32xf32> to vector<2x32xbf16>
    %c0_44 = arith.constant 0 : index
    %c0_45 = arith.constant 0 : index
    %c0_46 = arith.constant 0 : index
    %162 = vector.load %arg9[%c0_44, %c0_45, %c0_46] : memref<1x32x32xbf16, #tpu.memory_space<vmem>>, vector<1x32x32xbf16>
    %163 = vector.shape_cast %162 : vector<1x32x32xbf16> to vector<32x32xbf16>
    %cst_47 = arith.constant dense<0.000000e+00> : vector<2x32xf32>
    %164 = tpu.matmul %161, %163, %cst_47 {dimension_numbers = #tpu.dot_dimension_numbers<[1], [0], [0], [1], [0, 0, 1, 1], [], []>} : vector<2x32xbf16>, vector<32x32xbf16>, vector<2x32xf32> -> vector<2x32xf32>
    %165 = arith.addf %3, %164 : vector<2x32xf32>
    %c0_48 = arith.constant 0 : index
    %c0_49 = arith.constant 0 : index
    %c0_50 = arith.constant 0 : index
    %166 = vector.load %arg7[%c0_48, %c0_49, %c0_50] : memref<1x1x32xf32, #tpu.memory_space<vmem>>, vector<1x1x32xf32>
    %167 = vector.shape_cast %166 : vector<1x1x32xf32> to vector<1x32xf32>
    %168 = arith.mulf %165, %165 : vector<2x32xf32>
    %cst_51 = arith.constant dense<0.000000e+00> : vector<2xf32>
    %169 = vector.multi_reduction <add>, %168, %cst_51 [1] : vector<2x32xf32> to vector<2xf32>
    %170 = vector.shape_cast %169 : vector<2xf32> to vector<2x1xf32>
    %cst_52 = arith.constant 3.200000e+01 : f32
    %171 = vector.broadcast %cst_52 : f32 to vector<2x1xf32>
    %172 = arith.divf %170, %171 : vector<2x1xf32>
    %cst_53 = arith.constant 9.99999974E-6 : f32
    %173 = vector.broadcast %cst_53 : f32 to vector<2x1xf32>
    %174 = arith.addf %172, %173 : vector<2x1xf32>
    %175 = math.rsqrt %174 : vector<2x1xf32>
    %176 = vector.broadcast %175 : vector<2x1xf32> to vector<2x32xf32>
    %177 = arith.mulf %165, %176 : vector<2x32xf32>
    %178 = vector.broadcast %167 : vector<1x32xf32> to vector<2x32xf32>
    %179 = arith.mulf %177, %178 : vector<2x32xf32>
    %180 = arith.truncf %179 : vector<2x32xf32> to vector<2x32xbf16>
    %c0_54 = arith.constant 0 : index
    %c0_55 = arith.constant 0 : index
    %c0_56 = arith.constant 0 : index
    %181 = vector.load %arg10[%c0_54, %c0_55, %c0_56] : memref<1x32x192xbf16, #tpu.memory_space<vmem>>, vector<1x32x192xbf16>
    %182 = vector.shape_cast %181 : vector<1x32x192xbf16> to vector<32x192xbf16>
    %cst_57 = arith.constant dense<0.000000e+00> : vector<2x192xf32>
    %183 = tpu.matmul %180, %182, %cst_57 {dimension_numbers = #tpu.dot_dimension_numbers<[1], [0], [0], [1], [0, 0, 1, 1], [], []>} : vector<2x32xbf16>, vector<32x192xbf16>, vector<2x192xf32> -> vector<2x192xf32>
    %184 = vector.extract_strided_slice %183 {offsets = [0, 0], sizes = [2, 96], strides = [1, 1]} : vector<2x192xf32> to vector<2x96xf32>
    %185 = vector.extract_strided_slice %183 {offsets = [0, 96], sizes = [2, 96], strides = [1, 1]} : vector<2x192xf32> to vector<2x96xf32>
    %186 = arith.negf %184 : vector<2x96xf32>
    %187 = math.exp %186 : vector<2x96xf32>
    %cst_58 = arith.constant 1.000000e+00 : f32
    %188 = vector.broadcast %cst_58 : f32 to vector<2x96xf32>
    %189 = arith.addf %188, %187 : vector<2x96xf32>
    %190 = arith.divf %188, %189 : vector<2x96xf32>
    %191 = arith.mulf %184, %190 : vector<2x96xf32>
    %192 = arith.mulf %191, %185 : vector<2x96xf32>
    %193 = arith.truncf %192 : vector<2x96xf32> to vector<2x96xbf16>
    %c0_59 = arith.constant 0 : index
    %c0_60 = arith.constant 0 : index
    %c0_61 = arith.constant 0 : index
    %194 = vector.load %arg11[%c0_59, %c0_60, %c0_61] : memref<1x96x32xbf16, #tpu.memory_space<vmem>>, vector<1x96x32xbf16>
    %195 = vector.shape_cast %194 : vector<1x96x32xbf16> to vector<96x32xbf16>
    %cst_62 = arith.constant dense<0.000000e+00> : vector<2x32xf32>
    %196 = tpu.matmul %193, %195, %cst_62 {dimension_numbers = #tpu.dot_dimension_numbers<[1], [0], [0], [1], [0, 0, 1, 1], [], []>} : vector<2x96xbf16>, vector<96x32xbf16>, vector<2x32xf32> -> vector<2x32xf32>
    %197 = arith.addf %165, %196 : vector<2x32xf32>
    %c0_63 = arith.constant 0 : index
    %c0_64 = arith.constant 0 : index
    %198 = vector.load %arg14[%c0_63, %c0_64] : memref<2x32xf32, #tpu.memory_space<vmem>>, vector<2x32xf32>
    tpu.vector_store %arg14[%c0_63, %c0_64], %197 {strides = array<i32>} : memref<2x32xf32, #tpu.memory_space<vmem>>, vector<2x32xf32>,
    return
  }
  func.func @transform_0(%arg0: i32, %arg1: memref<1xi32, #tpu.memory_space<smem>>) -> (i32, i32) {
    %c0_i32 = arith.constant 0 : i32
    %c0_i32_0 = arith.constant 0 : i32
    %c0_i32_1 = arith.constant 0 : i32
    return %c0_i32, %c0_i32_0 : i32, i32
  }
  func.func @transform_1(%arg0: i32, %arg1: memref<1xi32, #tpu.memory_space<smem>>) -> (i32, i32) {
    %c0_i32 = arith.constant 0 : i32
    %c0_i32_0 = arith.constant 0 : i32
    %c0_i32_1 = arith.constant 0 : i32
    return %c0_i32, %c0_i32_0 : i32, i32
  }
  func.func @transform_2(%arg0: i32, %arg1: memref<1xi32, #tpu.memory_space<smem>>) -> (i32, i32) {
    %c0_i32 = arith.constant 0 : i32
    %c0_i32_0 = arith.constant 0 : i32
    %c0_i32_1 = arith.constant 0 : i32
    return %c0_i32, %c0_i32_0 : i32, i32
  }
  func.func @transform_3(%arg0: i32, %arg1: memref<1xi32, #tpu.memory_space<smem>>) -> (i32, i32) {
    %c0_i32 = arith.constant 0 : i32
    %c0_i32_0 = arith.constant 0 : i32
    %c0_i32_1 = arith.constant 0 : i32
    return %c0_i32, %c0_i32_0 : i32, i32
  }
  func.func @transform_4(%arg0: i32, %arg1: memref<1xi32, #tpu.memory_space<smem>>) -> (i32, i32, i32) {
    %c0_i32 = arith.constant 0 : i32
    %c0_i32_0 = arith.constant 0 : i32
    %c0_i32_1 = arith.constant 0 : i32
    return %arg0, %c0_i32, %c0_i32_0 : i32, i32, i32
  }
  func.func @transform_5(%arg0: i32, %arg1: memref<1xi32, #tpu.memory_space<smem>>) -> (i32, i32, i32) {
    %c0_i32 = arith.constant 0 : i32
    %c0_i32_0 = arith.constant 0 : i32
    %c0_i32_1 = arith.constant 0 : i32
    return %arg0, %c0_i32, %c0_i32_0 : i32, i32, i32
  }
  func.func @transform_6(%arg0: i32, %arg1: memref<1xi32, #tpu.memory_space<smem>>) -> (i32, i32, i32) {
    %c0_i32 = arith.constant 0 : i32
    %c0_i32_0 = arith.constant 0 : i32
    %c0_i32_1 = arith.constant 0 : i32
    return %arg0, %c0_i32, %c0_i32_0 : i32, i32, i32
  }
  func.func @transform_7(%arg0: i32, %arg1: memref<1xi32, #tpu.memory_space<smem>>) -> (i32, i32, i32) {
    %c0_i32 = arith.constant 0 : i32
    %c0_i32_0 = arith.constant 0 : i32
    %c0_i32_1 = arith.constant 0 : i32
    return %arg0, %c0_i32, %c0_i32_0 : i32, i32, i32
  }
  func.func @transform_8(%arg0: i32, %arg1: memref<1xi32, #tpu.memory_space<smem>>) -> (i32, i32, i32) {
    %c0_i32 = arith.constant 0 : i32
    %c0_i32_0 = arith.constant 0 : i32
    %c0_i32_1 = arith.constant 0 : i32
    return %arg0, %c0_i32, %c0_i32_0 : i32, i32, i32
  }
  func.func @transform_9(%arg0: i32, %arg1: memref<1xi32, #tpu.memory_space<smem>>) -> (i32, i32, i32) {
    %c0_i32 = arith.constant 0 : i32
    %c0_i32_0 = arith.constant 0 : i32
    %c0_i32_1 = arith.constant 0 : i32
    return %arg0, %c0_i32, %c0_i32_0 : i32, i32, i32
  }
  func.func @transform_10(%arg0: i32, %arg1: memref<1xi32, #tpu.memory_space<smem>>) -> (i32, i32, i32, i32) {
    %c0_i32 = arith.constant 0 : i32
    %c0_i32_0 = arith.constant 0 : i32
    %c0_i32_1 = arith.constant 0 : i32
    %c0_i32_2 = arith.constant 0 : i32
    return %arg0, %c0_i32, %c0_i32_0, %c0_i32_1 : i32, i32, i32, i32
  }
  func.func @transform_11(%arg0: i32, %arg1: memref<1xi32, #tpu.memory_space<smem>>) -> (i32, i32, i32, i32) {
    %c0_i32 = arith.constant 0 : i32
    %c0_i32_0 = arith.constant 0 : i32
    %c0_i32_1 = arith.constant 0 : i32
    %c0_i32_2 = arith.constant 0 : i32
    return %arg0, %c0_i32, %c0_i32_0, %c0_i32_1 : i32, i32, i32, i32
  }
  func.func @transform_12(%arg0: i32, %arg1: memref<1xi32, #tpu.memory_space<smem>>) -> (i32, i32) {
    %c0_i32 = arith.constant 0 : i32
    %c0_i32_0 = arith.constant 0 : i32
    %c0_i32_1 = arith.constant 0 : i32
    return %c0_i32, %c0_i32_0 : i32, i32
  }
  func.func @transform_13(%arg0: i32, %arg1: memref<1xi32, #tpu.memory_space<smem>>) -> (i32, i32, i32, i32) {
    %c0 = arith.constant 0 : index
    %0 = memref.load %arg1[%c0] : memref<1xi32, #tpu.memory_space<smem>>
    %c0_i32 = arith.constant 0 : i32
    %c0_i32_0 = arith.constant 0 : i32
    %c0_i32_1 = arith.constant 0 : i32
    return %arg0, %0, %c0_i32, %c0_i32_0 : i32, i32, i32, i32
  }
  func.func @transform_14(%arg0: i32, %arg1: memref<1xi32, #tpu.memory_space<smem>>) -> (i32, i32, i32, i32) {
    %c0 = arith.constant 0 : index
    %0 = memref.load %arg1[%c0] : memref<1xi32, #tpu.memory_space<smem>>
    %c0_i32 = arith.constant 0 : i32
    %c0_i32_0 = arith.constant 0 : i32
    %c0_i32_1 = arith.constant 0 : i32
    return %arg0, %0, %c0_i32, %c0_i32_0 : i32, i32, i32, i32
  }
}

</mosaic_0001>

<bundles_post_ra>
// kernel: eq.8
= control target key start
LH: loop header
LB: loop body
LE: loop exit
PB: predicated region body
PF: predicated region fallthrough
CT: control target
= control target key end

     0   :  { %s69_s10 = smov 14   ;;  %s70_s11 = smov 10   ;;  %vm3_vm0 = vcmask 15360   ;;  %vm9_vm1 = vcmask 130160   ;;  %vm15_vm2 = vcmask 113760   ;;  %vm21_vm3 = vcmask 97360   ;;  %s113_s0 = inlined_call_operand.vmem [shape: s32[8,2], index: 0, kind: input, shape index: {}]   ;;  %s114_s1 = inlined_call_operand.vmem [shape: s32[16], index: 1, kind: output, shape index: {}]  }
   0x1   :  { %v55_v0 = vld [vmem:[%s113_s0 + $0x7] sm:$0x1]   ;;  %v57_v1 = vld [vmem:[%s113_s0 + $0x5] sm:$0x1]   ;;  %v56_v2 = vld [vmem:[%s113_s0 + $0x6] sm:$0x1]  }
   0x2   :  { %7 = vrot.lane.b32.xlu0 %v55_v0, %s69_s10  ;;  %19 = vrot.lane.b32.xlu1 %v57_v1, %s70_s11  ;;  %v58_v3 = vld [vmem:[%s113_s0 + $0x4] sm:$0x1]   ;;  %v2_v4 = vld [vmem:[%s113_s0] sm:$0x1]   ;;  %s71_s18 = smov 12   ;;  %s72_s19 = smov 8  }
   0x3   :  { %4 = vst.msk [vmem:[#allocation0] sm:$0x1] %vm3_vm0, %v2_v4   ;;  %v59_v5 = vld [vmem:[%s113_s0 + $0x3] sm:$0x1]   ;;  %v60_v6 = vld [vmem:[%s113_s0 + $0x2] sm:$0x1]  }
   0x4   :  { %s73_s24 = smov 6   ;;  %s74_s25 = smov 4   ;;  %v61_v7 = vld [vmem:[%s113_s0 + $0x1] sm:$0x1]   ;;  %vm27_vm4 = vcmask 80960   ;;  %vm33_vm5 = vcmask 64560  }
   0x5   :  { %s75_s0 = smov 2   ;;  %vm39_vm6 = vcmask 48160   ;;  %vm45_vm7 = vcmask 31760  }
   0x6   :  { %13 = vrot.lane.b32.xlu0 %v56_v2, %s71_s18  ;;  %25 = vrot.lane.b32.xlu1 %v58_v3, %s72_s19 }
   0xa   :  { %31 = vrot.lane.b32.xlu0 %v59_v5, %s73_s24  ;;  %37 = vrot.lane.b32.xlu1 %v60_v6, %s74_s25 }
   0xe   :  { %43 = vrot.lane.b32.xlu0 %v61_v7, %s75_s0 }
  0x74   :  { %v8_v8 = vpop.permute.xlu0 %7   ;;  %v20_v9 = vpop.permute.xlu1 %19  }
  0x75   :  { %10 = vst.msk [vmem:[#allocation0] sm:$0x1] %vm9_vm1, %v8_v8  }
  0x78   :  { %v14_v10 = vpop.permute.xlu0 %13   ;;  %v26_v11 = vpop.permute.xlu1 %25  }
  0x79   :  { %16 = vst.msk [vmem:[#allocation0] sm:$0x1] %vm15_vm2, %v14_v10  }
  0x7a   :  { %22 = vst.msk [vmem:[#allocation0] sm:$0x1] %vm21_vm3, %v20_v9  }
  0x7b   :  { %28 = vst.msk [vmem:[#allocation0] sm:$0x1] %vm27_vm4, %v26_v11  }
  0x7c   :  { %v32_v12 = vpop.permute.xlu0 %31   ;;  %v38_v13 = vpop.permute.xlu1 %37  }
  0x7d   :  { %34 = vst.msk [vmem:[#allocation0] sm:$0x1] %vm33_vm5, %v32_v12  }
  0x7e   :  { %40 = vst.msk [vmem:[#allocation0] sm:$0x1] %vm39_vm6, %v38_v13  }
  0x80   :  { %v44_v14 = vpop.permute.xlu0 %43  }
  0x81   :  { %46 = vst.msk [vmem:[#allocation0] sm:$0x1] %vm45_vm7, %v44_v14  }
  0x88   :  { %v51_v15 = vld [vmem:[#allocation0] sm:$0x1] }
  0x89   :  { %54 = vst [vmem:[%s114_s1] sm:$0x1] %v51_v15 }

// kernel: forward.3
= control target key start
LH: loop header
LB: loop body
LE: loop exit
PB: predicated region body
PF: predicated region fallthrough
CT: control target
= control target key end

     0   :  { %vm18_vm0 = vcmask 254976   ;;  %s194_s0 = inlined_call_operand.vmem [shape: f32[2,32], index: 0, kind: input, shape index: {}]   ;;  %s195_s1 = inlined_call_operand.vmem [shape: f32[1,32], index: 1, kind: input, shape index: {}]   ;;  %s196_s2 = inlined_call_operand.vmem [shape: bf16[32,64], index: 2, kind: input, shape index: {}]   ;;  %s197_s3 = inlined_call_operand.hbm [shape: f32[2,64], index: 3, kind: output, shape index: {}]  }
   0x1   :  { %v16_v0 = vld [vmem:[%s194_s0] sm:$0x3] }
   0x2   :  { %v17_v1 = vmul.f32 %v16_v0, %v16_v0 }
   0x3   :  { %8 = vsyncpa [#allocation3], 0  ;;  %v130_v3 = vld [vmem:[%s196_s2 + $0x8] sm:$0xff]   ;;  %v156_v4 = vmov 0.0   ;;  %vm157_vm1 = vmmov 0   ;;  %v131_v5 = vld [vmem:[%s196_s2] sm:$0xff]  }
   0x4   :  { %v19_v2 = vsel %vm18_vm0, %v17_v1, 0.0  ;;  %119 = vmatprep.subr.bf16.mxu0 %v156_v4  ;;  %123 = vmatprep.mubr.msk.bf16.mxu0 %vm157_vm1, %v156_v4  ;;  %v112_v10 = vld [vmem:[%s195_s1] ss:$0 sm:$0xff]  ;;  %vm52_vm2 = vcmask 261120   ;;  %s158_s19 = smov [#allocation2]   ;;  %vm96_vm3 = vcmask 517120  }
   0x5   :  { %20 = vadd.xlane.f32.xlu0 %v19_v2  ;;  %120 = vmatpush3.bf16.msra.mxu0 %v130_v3  ;;  %s104_s20 = sshll.u32 %s158_s19, 4  ;;  %s105_s20 = int_to_ptr.vmem [resolvable:$true] %s104_s20 }
   0x6   :  { %121 = vmatprep.subr.bf16.mxu0 %v156_v4  ;;  %s134_s2 = scalar_lea.vmem %s105_s20, 32  ;;  %p139_p1 = scmp.lt.s32.totalorder %s105_s20, %s105_s20 }
   0x7   :  { %p135_p0 = scmp.ne.s32.totalorder %s105_s20, %s134_s2  ;;  %p140_p2 = scmp.lt.s32.totalorder %s134_s2, %s134_s2 }
   0x9   :  { %122 = vmatpush3.bf16.msra.mxu0 %v131_v5  ;;  %p141_p3 = por %p140_p2, %p139_p1 }
   0xb   :  { %p142_p4 = pnand %p141_p3, %p135_p0 }
  0x8e   :  { %v21_v6 = vpop.xlane.xlu0 %20 }
  0x8f   :  { %v23_v7 = vmul.f32 0.03125, %v21_v6 }
  0x91   :  { %v24_v8 = vadd.f32 1e-05, %v23_v7 }
  0x93   :  { %132 = vrsqrt.f32 %v24_v8 }
  0xa0   :  { %v133_v9 = vpop.eup %132 }
  0xa1   :  { %v26_v11 = vmul.f32 %v133_v9, %v16_v0 }
  0xa3   :  { %v34_v12 = vmul.f32 %v112_v10, %v26_v11 }
  0xa5   :  { %v35_v13 = vpack.c.bf16 %v34_v12, %v34_v12 }
  0xa7   :  { %124 = vmatmul.mubr.msk.bf16.vlgmr.msra.gmra.mxu0 %vm52_vm2, %v35_v13 }
 0x167   :  { %v90_v14 = vpop.f32.mrf.mxu0 }
 0x168   :  { %97 = vst.msk [vmem:[#allocation2] sm:$0x3] %vm96_vm3, %v90_v14 }
 0x169   :  { %v125_v15 = vpop.f32.mrf.mxu0 }
 0x16a   :  { %145 = shalt.err (!%p142_p4)
}
 0x16b   :  { %107 = dma.vmem_to_hbm [thread:$0]  %s105_s20, 32, %s197_s3, [#allocation3]   ;;  %v93_v16 = vpop.f32.mrf.mxu0 }
 0x16d   :  { %v126_v17 = vpop.f32.mrf.mxu0 }
 0x16e   :  { %154 = dma.done.wait [#allocation3], 32  }
 0x16f   :  { %155 = vsyncadd [#allocation3], 4294967264 }
 0x170   :  { %111 = vsyncpa [#allocation3], 1 }

// kernel: forward.2
= control target key start
LH: loop header
LB: loop body
LE: loop exit
PB: predicated region body
PF: predicated region fallthrough
CT: control target
= control target key end

     0   :  { %s2381_s20 = smov 0   ;;  %s2783_s0 = inlined_call_operand.<no memory space> [shape: s32[1], index: 0, kind: input, shape index: {}]   ;;  %s2784_s1 = inlined_call_operand.vmem [shape: f32[2,32], index: 1, kind: input, shape index: {}]   ;;  %s2785_s2 = inlined_call_operand.vmem [shape: f32[1,4], index: 2, kind: input, shape index: {}]   ;;  %s2786_s3 = inlined_call_operand.vmem [shape: f32[1,4], index: 3, kind: input, shape index: {}]   ;;  %s2787_s4 = inlined_call_operand.vmem [shape: f32[2,16], index: 4, kind: input, shape index: {}]   ;;  %s2788_s5 = inlined_call_operand.vmem [shape: f32[2,1,32], index: 5, kind: input, shape index: {}]   ;;  %s2789_s6 = inlined_call_operand.vmem [shape: f32[2,1,32], index: 6, kind: input, shape index: {}]   ;;  %s2790_s7 = inlined_call_operand.vmem [shape: bf16[2,32,64], index: 7, kind: input, shape index: {}]   ;;  %s2791_s8 = inlined_call_operand.vmem [shape: bf16[2,32,32], index: 8, kind: input, shape index: {}]   ;;  %s2792_s9 = inlined_call_operand.vmem [shape: bf16[2,32,192], index: 9, kind: input, shape index: {}]   ;;  %s2793_s10 = inlined_call_operand.vmem [shape: bf16[2,96,32], index: 10, kind: input, shape index: {}]   ;;  %s2794_s11 = inlined_call_operand.vmem [shape: bf16[2,8,2,16], index: 11, kind: input, shape index: {}, may-alias: {11,14}]   ;;  %s2795_s12 = inlined_call_operand.vmem [shape: bf16[2,8,2,16], index: 12, kind: input, shape index: {}, may-alias: {12,15}]   ;;  %s2796_s13 = inlined_call_operand.vmem [shape: f32[2,32], index: 13, kind: output, shape index: {0}]   ;;  %s2797_s14 = inlined_call_operand.vmem [shape: bf16[2,8,2,16], index: 14, kind: output, shape index: {1}, may-alias: {11,14}]   ;;  %s2798_s15 = inlined_call_operand.vmem [shape: bf16[2,8,2,16], index: 15, kind: output, shape index: {2}, may-alias: {12,15}]  }
   0x1   :  { %2800 = sst [smem:[#allocation5_spill]] %s2785_s2 }
   0x2   :  { %2801 = sst [smem:[#allocation6_spill]] %s2786_s3 }
   0x3   :  { %2802 = sst [smem:[#allocation7_spill]] %s2787_s4 }
   0x4   :  { %2803 = sst [smem:[#allocation8_spill]] %s2790_s7 }
   0x5   :  { %2804 = sst [smem:[#allocation9_spill]] %s2791_s8 }
   0x6   :  { %21 = sst [smem:[#allocation3]] %s2783_s0 }
   0x7 LB: > { %2805 = sst [smem:[#allocation4_spill]] %s2279_s20  ;;  %s2069_s21 = sadd.s32 4294967295, %s2279_s20   ;;  %s2279_s20 = sphi %s2381_s20, %s27_s20  }
   0x8   : > { %p2073_p0 = scmp.ge.s32.totalorder %s2279_s20, 1  ;;  %p486_p1 = scmp.lt.s32.totalorder %s2279_s20, 3 }
   0xa   : > { %p487_p2 = pnand %p2073_p0, %p486_p1 }
   0xb   : > { %p572_p3 = scmp.lt.s32.totalorder (!%p487_p2), %s2069_s21, 1  ;;  %s606_s22 = sld [smem:[#allocation3]] (!%p487_p2) }
   0xc   : > { %490 = sbr.rel (%p487_p2) target bundleno = 2916 (0xb64), region = 68  ;;  %s2806_s7 = sld [smem:[#allocation8_spill]] (!%p487_p2) }
   0xd   : > { %s2807_s8 = sld [smem:[#allocation9_spill]] (!%p487_p2)  ;;  %p2085_p5 = scmp.ne.s32.totalorder (!%p487_p2), %s2069_s21, 0 }
  0x11   : > { %s2389_s23 = scalar_select %p572_p3, %s2069_s21, 1 }
  0x12   : > { %p609_p4 = scmp.lt.s32.totalorder %s606_s22, 7 }
  0x13   : > { %s2117_s29 = sshll.u32 %s2389_s23, 4  ;;  %s2119_s30 = sshll.u32 %s2389_s23, 5 }
  0x14   : > { %s582_s18 = scalar_lea.vmem %s2806_s7, %s2117_s29  ;;  %s2407_s0 = scalar_lea.vmem %s2807_s8, %s2117_s29 }
  0x15   : > { %s2412_s2 = scalar_lea.vmem %s2792_s9, %s2119_s30  ;;  %s2197_s25 = smul.u32 48, %s2389_s23 }
  0x16   : > { %s2081_s3 = sshll.u32 %s2389_s23, 3  ;;  %s2815_s22 = smov (!%p609_p4, %s606_s22), 7 }
  0x17   : > { %s2419_s28 = scalar_lea.vmem %s2793_s10, %s2197_s25  ;;  %s2424_s7 = scalar_lea.vmem %s2794_s11, %s2081_s3 }
  0x18   : > { %s2429_s19 = scalar_lea.vmem %s2795_s12, %s2081_s3  ;;  %s2431_s4 = sadd.s32 %s2081_s3, %s2815_s22 }
  0x19   : > { %s613_s25 = scalar_lea.vmem %s2797_s14, %s2431_s4  ;;  %s622_s16 = scalar_lea.vmem %s2798_s15, %s2431_s4 }
  0x1a   : > { %628 = sbr.rel (%p2085_p5) target bundleno = 33 (0x21), region = 72 }
  0x1f   : > { %v629_v0 = vld [vmem:[%s2784_s1] sm:$0x3]  ;;  %vm630_vm0 = vcmask 254976  }
  0x20   : > { %631 = vst.msk [vmem:[%s2796_s13] sm:$0x3] %vm630_vm0, %v629_v0 }
  0x21 PF: > { %vm635_vm1 = vcmask 254976   ;;  %v2225_v4 = vld [vmem:[%s582_s18 + $0x8] sm:$0xff]   ;;  %v2281_v5 = vmov 0.0   ;;  %vm2282_vm2 = vmmov 0   ;;  %v2226_v6 = vld [vmem:[%s582_s18] sm:$0xff]   ;;  %s2808_s30 = scalar_lea.vmem %s2788_s5, %s2389_s23  ;;  %vm668_vm3 = vcmask 261120  }
  0x22   : > { %2141 = vmatprep.subr.bf16.mxu0 %v2281_v5  ;;  %2145 = vmatprep.mubr.msk.bf16.mxu0 %vm2282_vm2, %v2281_v5  ;;  %v2086_v11 = vld [vmem:[%s2808_s30] ss:$0 sm:$0xff]  ;;  %s2283_s18 = smov 96   ;;  %s2284_s24 = smov 120   ;;  %v2286_v22 = vmov 1934713408   ;;  %v726_v24 = vlaneseq }
  0x23   : > { %2142 = vmatpush3.bf16.msra.mxu0 %v2225_v4  ;;  %2161 = vmatprep.subr.bf16.mxu1 %v2281_v5  ;;  %s2809_s17 = sld [smem:[#allocation6_spill]]  ;;  %s2285_s20 = smov 4   ;;  %v740_v23 = vunpack.c.l.s4 %v2286_v22  ;;  %vm810_vm4 = vcmask 31744   ;;  %v2291_v56 = vmov 1983009808   ;;  %vm858_vm5 = vcmask 64512  }
  0x24   : > { %2143 = vmatprep.subr.bf16.mxu0 %v2281_v5  ;;  %2163 = vmatprep.mubr.msk.bf16.mxu1 %vm2282_vm2, %v2281_v5  ;;  %s2810_s29 = sld [smem:[#allocation5_spill]]  ;;  %v2494_v27 = vshrl.u32 %v726_v24, 7  ;;  %s2287_s8 = smov 124   ;;  %v724_v57 = vunpack.c.l.s4 %v2291_v56  ;;  %vm861_vm6 = vcmask 122880   ;;  %vm1412_vm7 = vcmask 60418  }
  0x25   : > { %v741_v25 = vunpack.c.0.s8 %v740_v23  ;;  %s2288_s21 = smov 112   ;;  %s2289_s30 = smov 8   ;;  %vm1078_vm8 = vcmask 123904   ;;  %vm1071_vm9 = vcmask 58368   ;;  %vm1177_vm10 = vcmask 130048  }
  0x26   : > { %v725_v58 = vunpack.c.0.s8 %v724_v57  ;;  %v1404_v57 = vsub.s32 1, %v2494_v27  ;;  %vm1829_vm11 = vcmask 785408  }
  0x27   : > { %v2450_v1 = vld [vmem:[%s2796_s13] sm:$0x3]  ;;  %2144 = vmatpush3.bf16.msra.mxu0 %v2226_v6  ;;  %v2497_v28 = vsub.s32 %v741_v25, %v2494_v27 }
  0x28   : > { %v634_v2 = vmul.f32 %v2450_v1, %v2450_v1  ;;  %2149 = vmatprep.subr.bf16.mxu0 %v2281_v5  ;;  %v2532_v63 = vsub.s32 %v725_v58, %v2494_v27 }
  0x29   : > { %v2483_v20 = vld [vmem:[%s2809_s17] ss:$0 sm:$0xff]  ;;  %s2811_s17 = sld [smem:[#allocation7_spill]] }
  0x2a   : > { %v636_v3 = vsel %vm635_vm1, %v634_v2, 0.0  ;;  %v2490_v21 = vld [vmem:[%s2810_s29] ss:$0 sm:$0xff]  ;;  %v2292_v2 = vmov 1966171168  }
  0x2b   : > { %637 = vadd.xlane.f32.xlu0 %v636_v3  ;;  %v866_v3 = vunpack.c.l.s4 %v2292_v2 }
  0xb4   : > { %v638_v7 = vpop.xlane.xlu0 %637 }
  0xb5   : > { %v640_v8 = vmul.f32 0.03125, %v638_v7 }
  0xb7   : > { %v641_v9 = vadd.f32 1e-05, %v640_v8 }
  0xb9   : > { %2241 = vrsqrt.f32 %v641_v9  ;;  %v867_v9 = vunpack.c.0.s8 %v866_v3 }
  0xc6   : > { %v2242_v10 = vpop.eup %2241 }
  0xc7   : > { %v643_v12 = vmul.f32 %v2242_v10, %v2450_v1 }
  0xc9   : > { %v650_v13 = vmul.f32 %v2086_v11, %v643_v12 }
  0xcb   : > { %v651_v14 = vpack.c.bf16 %v650_v13, %v650_v13 }
  0xcd   : > { %2146 = vmatmul.mubr.msk.bf16.vlgmr.msra.gmra.mxu0 %vm668_vm3, %v651_v14 }
  0xce   : > { %2151 = vmatprep.mubr.msk.bf16.mxu0 %vm2282_vm2, %v2281_v5 }
 0x18d   : > { %v2472_v15 = vpop.f32.mrf.mxu0 }
 0x18e   : > { %747 = vrot.lane.b32.xlu1 %v2472_v15, %s2283_s18  ;;  %713 = vrot.lane.b32.xlu0 %v2472_v15, %s2284_s24 }
 0x18f   : > { %v2147_v16 = vpop.f32.mrf.mxu0 }
 0x190   : > { %v2549_v16 = vsub.s32 %v867_v9, %v2494_v27 }
 0x191   : > { %v709_v17 = vpop.f32.mrf.mxu0 }
 0x193   : > { %v2148_v18 = vpop.f32.mrf.mxu0 }
 0x200   : > { %v2477_v19 = vpop.permute.xlu0 %713  ;;  %v748_v26 = vpop.permute.xlu1 %747 }
 0x201   : > { %749 = vrot.lane.b32.xlu1 %v2477_v19, %s2283_s18  ;;  %s2290_s18 = smov 104  }
 0x205   : > { %778 = vrot.lane.b32.xlu1 %v2483_v20, %s2285_s20 }
 0x209   : > { %793 = vrot.lane.b32.xlu1 %v2490_v21, %s2285_s20 }
 0x273   : > { %v750_v29 = vpop.permute.xlu1 %749 }
 0x274   : > { %v753_v30 = vcombine.low %v748_v26, %v750_v29 }
 0x276   : > { %v760_v31 = vrot.slane %v753_v30, %v2497_v28 }
 0x277   : > { %v2500_v32 = vpop.permute.xlu1 %778 }
 0x278   : > { %v817_v33 = vmul.f32 %v2500_v32, %v760_v31  ;;  %v761_v34 = vcombine.high %v760_v31, %v2281_v5  ;;  %v831_v37 = vmul.f32 %v2483_v20, %v760_v31  ;;  %v815_v43 = vmul.f32 %v2490_v21, %v760_v31 }
 0x27a   : > { %821 = vrot.lane.b32.xlu1 %v817_v33, %s2287_s8  ;;  %v832_v35 = vmul.f32 %v2483_v20, %v761_v34  ;;  %v818_v36 = vmul.f32 %v2500_v32, %v761_v34  ;;  %v816_v41 = vmul.f32 %v2490_v21, %v761_v34 }
 0x27b   : > { %v2512_v38 = vpop.permute.xlu1 %793 }
 0x27c   : > { %837 = vrot.lane.b32.xlu0 %v832_v35, %s2285_s20  ;;  %v830_v44 = vmul.f32 %v2512_v38, %v761_v34  ;;  %v829_v46 = vmul.f32 %v2512_v38, %v760_v31 }
 0x27e   : > { %823 = vrot.lane.b32.xlu1 %v818_v36, %s2287_s8 }
 0x280   : > { %716 = vrot.lane.b32.xlu0 %v2472_v15, %s2288_s21 }
 0x282   : > { %835 = vrot.lane.b32.xlu1 %v831_v37, %s2285_s20 }
 0x2ec   : > { %v822_v39 = vpop.permute.xlu1 %821 }
 0x2ed   : > { %v827_v48 = vsub.f32 %v815_v43, %v822_v39 }
 0x2ee   : > { %v838_v42 = vpop.permute.xlu0 %837 }
 0x2ef   : > { %v842_v49 = vadd.f32 %v838_v42, %v830_v44 }
 0x2f0   : > { %v824_v40 = vpop.permute.xlu1 %823 }
 0x2f1   : > { %v828_v45 = vsub.f32 %v816_v41, %v824_v40 }
 0x2f2   : > { %v717_v59 = vpop.permute.xlu0 %716 }
 0x2f3   : > { %v2519_v51 = vsel %vm810_vm4, %v828_v45, %v842_v49  ;;  %v722_v0 = vcombine.low %v2472_v15, %v717_v59 }
 0x2f4   : > { %v836_v47 = vpop.permute.xlu1 %835 }
 0x2f5   : > { %v841_v50 = vadd.f32 %v836_v47, %v829_v46  ;;  %v729_v7 = vrot.slane %v722_v0, %v2532_v63 }
 0x2f7   : > { %v2522_v52 = vsel %vm810_vm4, %v827_v48, %v841_v50 }
 0x2f8   : > { %v845_v53 = vcombine.low %v2522_v52, %v2519_v51  ;;  %v1405_v0 = vrot.slane %v2522_v52, %v1404_v57 }
 0x2fa   : > { %v852_v54 = vrot.slane %v845_v53, %v2497_v28 }
 0x2fc   : > { %v853_v55 = vcombine.high %v852_v54, %v2281_v5 }
 0x2fe   : > { %855 = vrot.lane.b32.xlu1 %v853_v55, %s2289_s30 }
 0x302   : > { %719 = vrot.lane.b32.xlu1 %v2472_v15, %s2290_s18 }
 0x370   : > { %v856_v60 = vpop.permute.xlu1 %855 }
 0x371   : > { %v859_v61 = vsel %vm858_vm5, %v852_v54, %v856_v60 }
 0x372   : > { %v860_v62 = vpack.c.bf16 %v859_v61, %v859_v61  ;;  %v2581_v61 = vsub.s32 0, %v2494_v27 }
 0x374   : > { %862 = vst.msk [vmem:[%s613_s25] sm:$0x1] %vm861_vm6, %v860_v62  ;;  %v720_v4 = vpop.permute.xlu1 %719  ;;  %v1068_v9 = vrot.slane %v2519_v51, %v2581_v61 }
 0x375   : > { %v730_v6 = vcombine.low %v2477_v19, %v720_v4 }
 0x377   : > { %v737_v8 = vrot.slane %v730_v6, %v2532_v63 }
 0x379   : > { %v738_v10 = vcombine.low %v729_v7, %v737_v8  ;;  %v1409_v7 = vrot.slane %v2519_v51, %v1404_v57 }
 0x37b   : > { %v745_v11 = vrot.slane %v738_v10, %v2497_v28  ;;  %v883_v12 = vld [vmem:[%s2424_s7] sm:$0x1]  ;;  %v884_v13 = vld [vmem:[%s2424_s7 + $0x1] sm:$0x1]  ;;  %v885_v14 = vld [vmem:[%s2424_s7 + $0x2] sm:$0x1] }
 0x37c   : > { %v886_v17 = vld [vmem:[%s2424_s7 + $0x3] sm:$0x1]  ;;  %v887_v18 = vld [vmem:[%s2424_s7 + $0x4] sm:$0x1]  ;;  %v888_v22 = vld [vmem:[%s2424_s7 + $0x5] sm:$0x1]  ;;  %v943_v19 = vcombine.low %v883_v12, %v884_v13 }
 0x37d   : > { %v781_v23 = vmul.f32 %v2500_v32, %v745_v11  ;;  %v746_v24 = vcombine.high %v745_v11, %v2281_v5  ;;  %v889_v25 = vld [vmem:[%s2424_s7 + $0x6] sm:$0x1]  ;;  %v890_v26 = vld [vmem:[%s2424_s7 + $0x7] sm:$0x1]  ;;  %v944_v29 = vcombine.low %v885_v14, %v886_v17  ;;  %v945_v30 = vcombine.low %v887_v18, %v888_v22 }
 0x37e   : > { %v946_v31 = vcombine.low %v889_v25, %v890_v26  ;;  %v953_v33 = vrot.slane %v943_v19, %v2549_v16  ;;  %v798_v39 = vmul.f32 %v2483_v20, %v745_v11  ;;  %v770_v48 = vmul.f32 %v2490_v21, %v745_v11 }
 0x37f   : > { %785 = vrot.lane.b32.xlu0 %v781_v23, %s2287_s8  ;;  %v782_v34 = vmul.f32 %v2500_v32, %v746_v24  ;;  %v960_v35 = vrot.slane %v944_v29, %v2549_v16  ;;  %v967_v36 = vrot.slane %v945_v30, %v2549_v16  ;;  %v799_v42 = vmul.f32 %v2483_v20, %v746_v24  ;;  %v2092_v23 = vld.sshfl [vmem:[%s2811_s17] sm:$0x11 pattern:$0x75316420] }
 0x380   : > { %v974_v37 = vrot.slane %v946_v31, %v2549_v16  ;;  %v796_v20 = vmul.f32 %v2512_v38, %v745_v11  ;;  %v771_v53 = vmul.f32 %v2490_v21, %v746_v24  ;;  %v797_v55 = vmul.f32 %v2512_v38, %v746_v24 }
 0x381   : > { %787 = vrot.lane.b32.xlu1 %v782_v34, %s2287_s8  ;;  %v975_v40 = vcombine.low %v953_v33, %v960_v35  ;;  %v1064_v21 = vrot.slane %v2522_v52, %v2581_v61  ;;  %v908_v24 = vcombine.high %v2092_v23, %v2092_v23  ;;  %v915_v25 = vrot.slane %v2092_v23, %v2549_v16 }
 0x382   : > { %v976_v41 = vcombine.low %v967_v36, %v974_v37 }
 0x383   : > { %802 = vrot.lane.b32.xlu0 %v798_v39, %s2285_s20  ;;  %v983_v43 = vrot.slane %v975_v40, %v2549_v16  ;;  %v922_v29 = vrot.slane %v908_v24, %v2549_v16  ;;  %v1052_v34 = vrot.slane %v915_v25, %v2581_v61 }
 0x384   : > { %v990_v32 = vrot.slane %v976_v41, %v2549_v16 }
 0x385   : > { %804 = vrot.lane.b32.xlu1 %v799_v42, %s2285_s20  ;;  %v1056_v40 = vrot.slane %v922_v29, %v2581_v61  ;;  %s2294_s20 = smov 80  }
 0x386   : > { %v991_v44 = vcombine.low %v983_v43, %v990_v32 }
 0x388   : > { %v996_v45 = vsel %vm858_vm5, %v991_v44, 0  ;;  %1341 = vrot.lane.b32.xlu0 %v991_v44, %s2284_s24 }
 0x389   : > { %2150 = vmatpush3.bf16.xpose.msra.mxu0 %v996_v45 }
 0x38a   : > { %2155 = vmatprep.subr.bf16.mxu0 %v2281_v5 }
 0x3f1   : > { %v786_v46 = vpop.permute.xlu0 %785 }
 0x3f2   : > { %v791_v50 = vsub.f32 %v770_v48, %v786_v46 }
 0x3f3   : > { %v788_v47 = vpop.permute.xlu1 %787 }
 0x3f4   : > { %v792_v58 = vsub.f32 %v771_v53, %v788_v47 }
 0x3f5   : > { %v803_v49 = vpop.permute.xlu0 %802 }
 0x3f6   : > { %v808_v54 = vadd.f32 %v803_v49, %v796_v20 }
 0x3f7   : > { %v805_v56 = vpop.permute.xlu1 %804 }
 0x3f8   : > { %v811_v59 = vsel %vm810_vm4, %v791_v50, %v808_v54  ;;  %v809_v60 = vadd.f32 %v805_v56, %v797_v55  ;;  %v863_v50 = vpack.c.bf16 %v2472_v15, %v2472_v15  ;;  %v2293_v55 = vmov 0  }
 0x3f9   : > { %v813_v62 = vmul.f32 0.35355338, %v811_v59  ;;  %2224 = vset.pattern.permute.xlu0 %v2293_v55  ;;  %2223 = vset.pattern.permute.xlu1 %v2293_v55 }
 0x3fa   : > { %v812_v2 = vsel %vm810_vm4, %v792_v58, %v809_v60  ;;  %v1342_v3 = vpop.permute.xlu0 %1341  ;;  %v871_v56 = vrot.slane %v863_v50, %v2549_v16 }
 0x3fb   : > { %v814_v38 = vmul.f32 0.35355338, %v812_v2  ;;  %v1347_v4 = vsel %vm858_vm5, %v1342_v3, 0  ;;  %v1410_v6 = vmul.f32 %v1405_v0, %v813_v62  ;;  %v1321_v27 = vrot.slane %v813_v62, %v2532_v63 }
 0x3fc   : > { %2162 = vmatpush3.bf16.xpose.msra.mxu1 %v1347_v4  ;;  %v1069_v8 = vmul.f32 %v1064_v21, %v813_v62  ;;  %v878_v58 = vrot.slane %v871_v56, %v2549_v16 }
 0x3fd   : > { %v925_v10 = vcombine.low %v813_v62, %v814_v38  ;;  %v1413_v11 = vsel %vm1412_vm7, %v1410_v6, 0.0  ;;  %v1411_v12 = vmul.f32 %v1409_v7, %v814_v38  ;;  %v1329_v13 = vrot.slane %v814_v38, %v2532_v63  ;;  %2173 = vmatprep.subr.bf16.mxu1 %v2281_v5 }
 0x3fe   : > { %1414 = vadd.xlane.f32.xlu1 %v1413_v11  ;;  %v1070_v52 = vmul.f32 %v1068_v9, %v814_v38  ;;  %v1072_v47 = vsel %vm1071_vm9, %v1069_v8, 0.0 }
 0x3ff   : > { %v1416_v14 = vsel %vm1412_vm7, %v1411_v12, 0.0  ;;  %v932_v17 = vrot.slane %v925_v10, %v2532_v63  ;;  %v2095_v18 = vcombine.high %v1321_v27, %v1329_v13 }
 0x400   : > { %1417 = vadd.xlane.f32.xlu0 %v1416_v14  ;;  %v1075_v20 = vsel %vm1071_vm9, %v1070_v52, 0.0 }
 0x401   : > { %v934_v22 = vpack.c.bf16 %v932_v17, %v932_v17  ;;  %v1338_v19 = vrot.slane %v2095_v18, %v2532_v63 }
 0x403   : > { %2152 = vmatmul.mubr.msk.bf16.vlgmr.msra.gmra.mxu0 %vm858_vm5, %v934_v22  ;;  %v1340_v51 = vpack.c.bf16 %v1338_v19, %v1338_v19 }
 0x404   : > { %2157 = vmatprep.mubr.msk.bf16.mxu0 %vm2282_vm2, %v2281_v5 }
 0x405   : > { %2164 = vmatmul.mubr.msk.bf16.vlgmr.msra.gmra.mxu1 %vm858_vm5, %v1340_v51 }
 0x406   : > { %2177 = vmatprep.mubr.msk.bf16.mxu1 %vm2282_vm2, %v2281_v5 }
 0x487   : > { %v2630_v59 = vpop.xlane.xlu1 %1414 }
 0x488   : > { %v1427_v62 = vrot.slane %v2630_v59, 2 }
 0x489   : > { %v2632_v60 = vpop.xlane.xlu0 %1417 }
 0x48a   : > { %v1428_v2 = vrot.slane %v2632_v60, 2 }
 0x4c3   : > { %v1032_v26 = vpop.f32.mrf.mxu0 }
 0x4c4   : > { %v1045_v46 = vrot.slane %v1032_v26, %v2532_v63 }
 0x4c5   : > { %v2153_v30 = vpop.f32.mrf.mxu0  ;;  %v1383_v31 = vpop.f32.mrf.mxu1 }
 0x4c6   : > { %v1396_v33 = vrot.slane %v1383_v31, %v2532_v63  ;;  %v1046_v48 = vcombine.high %v1045_v46, %v1045_v46  ;;  %v1059_v49 = vadd.f32 %v1052_v34, %v1045_v46 }
 0x4c7   : > { %v1035_v35 = vpop.f32.mrf.mxu0  ;;  %v2165_v36 = vpop.f32.mrf.mxu1 }
 0x4c8   : > { %v1397_v37 = vcombine.high %v1396_v33, %v1396_v33  ;;  %v2611_v39 = vadd.f32 %v1396_v33, %v1052_v34  ;;  %v1079_v53 = vsel %vm1078_vm8, %v1059_v49, -inf  ;;  %v1060_v54 = vadd.f32 %v1056_v40, %v1046_v48 }
 0x4c9   : > { %v2154_v41 = vpop.f32.mrf.mxu0  ;;  %v1386_v42 = vpop.f32.mrf.mxu1 }
 0x4ca   : > { %v1419_v43 = vsel %vm1078_vm8, %v2611_v39, -inf  ;;  %v2616_v32 = vadd.f32 %v1397_v37, %v1056_v40  ;;  %v1082_v57 = vsel %vm1078_vm8, %v1060_v54, -inf }
 0x4cb   : > { %1420 = vmax.xlane.f32.xlu0 %v1419_v43  ;;  %v2166_v44 = vpop.f32.mrf.mxu1 }
 0x4cc   : > { %v1422_v45 = vsel %vm1078_vm8, %v2616_v32, -inf }
 0x4cd   : > { %1423 = vmax.xlane.f32.xlu1 %v1422_v45 }
 0x4d1   : > { %1073 = vadd.xlane.f32.xlu1 %v1072_v47 }
 0x4d5   : > { %1076 = vadd.xlane.f32.xlu1 %v1075_v20 }
 0x4d9   : > { %1080 = vmax.xlane.f32.xlu1 %v1079_v53 }
 0x4dd   : > { %1083 = vmax.xlane.f32.xlu1 %v1082_v57 }
 0x4e1   : > { %879 = vrot.lane.b32.xlu0 %v878_v58, %s2294_s20 }
 0x554   : > { %v1421_v0 = vpop.xlane.xlu0 %1420 }
 0x555   : > { %v2636_v3 = vmax.f32 %v1421_v0, %v1427_v62 }
 0x556   : > { %v1424_v21 = vpop.xlane.xlu1 %1423 }
 0x557   : > { %v2638_v38 = vmax.f32 %v1424_v21, %v1428_v2  ;;  %1435 = vperm.xlu1 %2223, %v2636_v3   ;;  %v1449_v0 = vrot.slane %v2636_v3, 6 }
 0x558   : > { %v880_v4 = vpop.permute.xlu0 %879 }
 0x559   : > { %882 = vst.msk [vmem:[%s622_s16] sm:$0x1] %vm861_vm6, %v880_v4  ;;  %1440 = vperm.xlu0 %2224, %v2638_v38   ;;  %v1450_v58 = vrot.slane %v2638_v38, 6 }
 0x55a   : > { %v2648_v6 = vpop.xlane.xlu1 %1073 }
 0x55b   : > { %v1454_v2 = vsub.f32 %v2632_v60, %v1450_v58 }
 0x55e   : > { %v2650_v7 = vpop.xlane.xlu1 %1076 }
 0x560   : > { %v891_v27 = vld [vmem:[%s2429_s19] sm:$0x1]  ;;  %v892_v8 = vld [vmem:[%s2429_s19 + $0x1] sm:$0x1]  ;;  %v893_v9 = vld [vmem:[%s2429_s19 + $0x2] sm:$0x1] }
 0x561   : > { %v894_v10 = vld [vmem:[%s2429_s19 + $0x3] sm:$0x1]  ;;  %v895_v11 = vld [vmem:[%s2429_s19 + $0x4] sm:$0x1]  ;;  %v896_v12 = vld [vmem:[%s2429_s19 + $0x5] sm:$0x1]  ;;  %v1127_v13 = vcombine.low %v891_v27, %v892_v8 }
 0x562   : > { %v1081_v52 = vpop.xlane.xlu1 %1080  ;;  %v897_v14 = vld [vmem:[%s2429_s19 + $0x6] sm:$0x1]  ;;  %v898_v17 = vld [vmem:[%s2429_s19 + $0x7] sm:$0x1]  ;;  %v1128_v18 = vcombine.low %v893_v9, %v894_v10  ;;  %v1129_v22 = vcombine.low %v895_v11, %v896_v12  ;;  %v1457_v8 = vmul.f32 1.442695, %v1454_v2 }
 0x563   : > { %v2661_v19 = vmax.f32 %v1081_v52, %v2648_v6  ;;  %v1130_v51 = vcombine.low %v897_v14, %v898_v17  ;;  %v1137_v23 = vrot.slane %v1127_v13, %v2549_v16  ;;  %v1238_v17 = vrot.slane %v2472_v15, %v2549_v16  ;;  %s2295_s19 = smov 72  }
 0x564   : > { %v1144_v24 = vrot.slane %v1128_v18, %v2549_v16  ;;  %v1151_v25 = vrot.slane %v1129_v22, %v2549_v16 }
 0x565   : > { %v1087_v26 = vsub.f32 %v1059_v49, %v2661_v19  ;;  %v1093_v29 = vsub.f32 %v2648_v6, %v2661_v19  ;;  %v1158_v30 = vrot.slane %v1130_v51, %v2549_v16 }
 0x566   : > { %v1084_v31 = vpop.xlane.xlu1 %1083  ;;  %v1159_v33 = vcombine.low %v1137_v23, %v1144_v24 }
 0x567   : > { %v2671_v34 = vmax.f32 %v1084_v31, %v2650_v7  ;;  %v1160_v35 = vcombine.low %v1151_v25, %v1158_v30  ;;  %v1089_v36 = vmul.f32 1.442695, %v1087_v26  ;;  %v1239_v25 = vcombine.high %v1238_v17, %v1238_v17 }
 0x568   : > { %v1167_v37 = vrot.slane %v1159_v33, %v2549_v16 }
 0x569   : > { %v1088_v40 = vsub.f32 %v1060_v54, %v2671_v34  ;;  %v1094_v41 = vsub.f32 %v2650_v7, %v2671_v34  ;;  %v1174_v42 = vrot.slane %v1160_v35, %v2549_v16  ;;  %2243 = vpow2.f32 %v1089_v36 }
 0x56a   : > { %v1253_v26 = vrot.slane %v1239_v25, %v2549_v16 }
 0x56b   : > { %v1091_v43 = vmul.f32 1.442695, %v1088_v40  ;;  %v1175_v44 = vcombine.low %v1167_v37, %v1174_v42 }
 0x56c   : > { %v1261_v36 = vrot.slane %v1253_v26, %v2581_v61 }
 0x56d   : > { %2245 = vpow2.f32 %v1091_v43  ;;  %1485 = vrot.lane.b32.xlu0 %v1175_v44, %s2284_s24  ;;  %2156 = vmatpush3.bf16.msra.mxu0 %v1175_v44  ;;  %s2812_s24 = scalar_lea.vmem %s2789_s6, %s2389_s23 }
 0x56e   : > { %2167 = vmatprep.subr.bf16.mxu0 %v2281_v5 }
 0x576   : > { %v2680_v45 = vpop.eup %2243 }
 0x57a   : > { %v2682_v46 = vpop.eup %2245 }
 0x57b   : > { %v1109_v47 = vcombine.low %v2680_v45, %v2682_v46 }
 0x57d   : > { %v1116_v48 = vrot.slane %v1109_v47, %v2532_v63  ;;  %v1095_v47 = vmul.f32 1.442695, %v1093_v29 }
 0x57f   : > { %v1118_v20 = vpack.c.bf16 %v1116_v48, %v1116_v48  ;;  %v1097_v48 = vmul.f32 1.442695, %v1094_v41 }
 0x581   : > { %2158 = vmatmul.mubr.msk.bf16.vlgmr.msra.gmra.mxu0 %vm1177_vm10, %v1118_v20  ;;  %v1102_v20 = vsel %vm1078_vm8, %v2682_v46, 0.0 }
 0x582   : > { %2169 = vmatprep.mubr.msk.bf16.mxu0 %vm2282_vm2, %v2281_v5 }
 0x5d2   : > { %v1436_v49 = vpop.permute.xlu1 %1435 }
 0x5d3   : > { %v1443_v50 = vsub.f32 %v2611_v39, %v1436_v49  ;;  %v1453_v39 = vsub.f32 %v2630_v59, %v1449_v0 }
 0x5d4   : > { %v1441_v53 = vpop.permute.xlu0 %1440 }
 0x5d5   : > { %v1445_v54 = vmul.f32 1.442695, %v1443_v50  ;;  %v1444_v56 = vsub.f32 %v2616_v32, %v1441_v53  ;;  %v1455_v10 = vmul.f32 1.442695, %v1453_v39 }
 0x5d7   : > { %2247 = vpow2.f32 %v1445_v54  ;;  %v1447_v57 = vmul.f32 1.442695, %v1444_v56 }
 0x5d9   : > { %2249 = vpow2.f32 %v1447_v57 }
 0x5da   : > { %2251 = vpow2.f32 %v1457_v8 }
 0x5db   : > { %2253 = vpow2.f32 %v1455_v10 }
 0x5df   : > { %v1486_v62 = vpop.permute.xlu0 %1485 }
 0x5e0   : > { %2168 = vmatpush3.bf16.msra.mxu0 %v1486_v62 }
 0x5e4   : > { %v2248_v21 = vpop.eup %2247 }
 0x5e5   : > { %v1459_v4 = vsel %vm1078_vm8, %v2248_v21, 0.0 }
 0x5e6   : > { %v2250_v27 = vpop.eup %2249  ;;  %1460 = vadd.xlane.f32.xlu0 %v1459_v4 }
 0x5e7   : > { %v1462_v32 = vsel %vm1078_vm8, %v2250_v27, 0.0  ;;  %v1475_v9 = vcombine.low %v2248_v21, %v2250_v27  ;;  %v2252_v60 = vpop.eup %2251 }
 0x5e8   : > { %1463 = vadd.xlane.f32.xlu1 %v1462_v32  ;;  %v2254_v3 = vpop.eup %2253  ;;  %v1468_v51 = vrot.slane %v2252_v60, 2 }
 0x5e9   : > { %v1482_v38 = vrot.slane %v1475_v9, %v2532_v63  ;;  %v1467_v14 = vrot.slane %v2254_v3, 2 }
 0x5eb   : > { %v1484_v11 = vpack.c.bf16 %v1482_v38, %v1482_v38 }
 0x5ed   : > { %2170 = vmatmul.mubr.msk.bf16.vlgmr.msra.gmra.mxu0 %vm1177_vm10, %v1484_v11 }
 0x5ee   : > { %1755 = vmatprep.mubr.bf16.mxu0 %v2293_v55  ;;  %v1246_v55 = vrot.slane %v1238_v17, %v2549_v16 }
 0x5f0   : > { %v1257_v30 = vrot.slane %v1246_v55, %v2581_v61  ;;  %v1099_v61 = vsel %vm1078_vm8, %v2680_v45, 0.0 }
 0x5f9   : > { %1547 = vperm.xlu1 %2223, %v2252_v60  }
 0x5fc   : > { %1543 = vperm.xlu0 %2224, %v2254_v3  }
 0x641   : > { %v2701_v59 = vpop.f32.mrf.mxu0 }
 0x642   : > { %v1228_v60 = vrot.slane %v2701_v59, %v2532_v63 }
 0x643   : > { %v2159_v12 = vpop.f32.mrf.mxu0 }
 0x645   : > { %v1218_v13 = vpop.f32.mrf.mxu0 }
 0x646   : > { %v1229_v13 = vcombine.high %v1228_v60, %v1228_v60 }
 0x647   : > { %v2160_v52 = vpop.f32.mrf.mxu0 }
 0x66f   : > { %v1461_v18 = vpop.xlane.xlu0 %1460 }
 0x670   : > { %v1471_v22 = vadd.f32 %v1467_v14, %v1461_v18  ;;  %v2227_v14 = vld [vmem:[%s2407_s0 + $0x8] sm:$0xff]  }
 0x671   : > { %v1464_v23 = vpop.xlane.xlu1 %1463  ;;  %2174 = vmatpush3.bf16.msra.mxu1 %v2227_v14 }
 0x672   : > { %v1472_v24 = vadd.f32 %v1468_v51, %v1464_v23  ;;  %2255 = vrcp.f32 %v1471_v22  ;;  %v2228_v51 = vld [vmem:[%s2407_s0] sm:$0xff]   ;;  %2175 = vmatprep.subr.bf16.mxu1 %v2281_v5  ;;  %s2296_s0 = smov 16  }
 0x674   : > { %2257 = vrcp.f32 %v1472_v24 }
 0x675   : > { %v1548_v35 = vpop.permute.xlu1 %1547  ;;  %2259 = vpow2.f32 %v1095_v47  ;;  %2176 = vmatpush3.bf16.msra.mxu1 %v2228_v51  ;;  %v2229_v47 = vld [vmem:[%s2412_s2 + $0x10] ss:$8 sps:$4 sm:$0xff]  }
 0x676   : > { %v1551_v37 = vmul.f32 %v1548_v35, %v1261_v36  ;;  %2261 = vpow2.f32 %v1097_v48  ;;  %2181 = vmatprep.subr.bf16.mxu1 %v2281_v5  ;;  %v2234_v48 = vld [vmem:[%s2412_s2 + $0x4] ss:$8 sps:$4 sm:$0xff]  }
 0x677   : > { %v1544_v31 = vpop.permute.xlu0 %1543 }
 0x678   : > { %v1550_v33 = vmul.f32 %v1544_v31, %v1257_v30  ;;  %v1568_v43 = vrot.slane %v1551_v37, %v2532_v63 }
 0x67a   : > { %v1560_v15 = vrot.slane %v1550_v33, %v2532_v63  ;;  %v1569_v16 = vcombine.high %v1568_v43, %v1568_v43 }
 0x67c   : > { %v1561_v40 = vcombine.high %v1560_v15, %v1560_v15 }
 0x67e   : > { %1570 = vrot.lane.b32.xlu0 %v1561_v40, %s2295_s19 }
 0x67f   : > { %v2256_v42 = vpop.eup %2255 }
 0x681   : > { %v2258_v44 = vpop.eup %2257 }
 0x682   : > { %1582 = vperm.xlu0 %2224, %v2256_v42   ;;  %1587 = vperm.xlu1 %2223, %v2258_v44   ;;  %v2260_v50 = vpop.eup %2259 }
 0x683   : > { %v1264_v54 = vmul.f32 %v2260_v50, %v1257_v30  ;;  %v2262_v19 = vpop.eup %2261 }
 0x684   : > { %v1265_v56 = vmul.f32 %v2262_v19, %v1261_v36 }
 0x685   : > { %v1274_v45 = vrot.slane %v1264_v54, %v2532_v63  ;;  %v2101_v54 = vld [vmem:[%s2812_s24] ss:$0 sm:$0xff] }
 0x686   : > { %1572 = vrot.lane.b32.xlu1 %v1569_v16, %s2295_s19  ;;  %v1281_v7 = vrot.slane %v1265_v56, %v2532_v63  ;;  %v2235_v56 = vld [vmem:[%s2419_s28 + $0x28] sm:$0xff]  }
 0x6a1   : > { %1100 = vadd.xlane.f32.xlu0 %v1099_v61  ;;  %v2231_v61 = vld [vmem:[%s2412_s2 + $0x14] ss:$8 sps:$4 sm:$0xff]  }
 0x6a2   : > { %1735 = vmatprep.subr.bf16.mxu0 %v2231_v61 }
 0x6a3   : > { %1736 = vmatpush1.bf16.msra.mxu0 %v2229_v47 }
 0x6a4   : > { %1737 = vmatprep.subr.bf16.mxu0 %v2234_v48 }
 0x6aa   : > { %1103 = vadd.xlane.f32.xlu1 %v1102_v20  ;;  %v2232_v20 = vld [vmem:[%s2412_s2] ss:$8 sps:$4 sm:$0xff]   ;;  %s2297_s2 = smov 32  }
 0x6ab   : > { %1738 = vmatpush1.bf16.msra.mxu0 %v2232_v20 }
 0x6ad   : > { %v1525_v49 = vpop.f32.mrf.mxu0 }
 0x6ae   : > { %v1538_v34 = vrot.slane %v1525_v49, %v2532_v63 }
 0x6af   : > { %v2171_v53 = vpop.f32.mrf.mxu0 }
 0x6b0   : > { %v1539_v57 = vcombine.high %v1538_v34, %v1538_v34 }
 0x6b1   : > { %v1528_v6 = vpop.f32.mrf.mxu0 }
 0x6b3   : > { %v2172_v29 = vpop.f32.mrf.mxu0 }
 0x6b7   : > { %1282 = vrot.lane.b32.xlu0 %v1274_v45, %s2294_s20  ;;  %v2236_v45 = vld [vmem:[%s2419_s28 + $0x20] sm:$0xff]  }
 0x6bb   : > { %1284 = vrot.lane.b32.xlu1 %v1281_v7, %s2294_s20  ;;  %v2237_v7 = vld [vmem:[%s2419_s28 + $0x18] sm:$0xff]  }
 0x6f0   : > { %v1571_v41 = vpop.permute.xlu0 %1570 }
 0x6f1   : > { %v1576_v0 = vadd.f32 %v1571_v41, %v1538_v34  ;;  %v2238_v34 = vld [vmem:[%s2419_s28 + $0x10] sm:$0xff]   ;;  %v2239_v41 = vld [vmem:[%s2419_s28 + $0x8] sm:$0xff]  }
 0x6fd   : > { %v1588_v46 = vpop.permute.xlu1 %1587  ;;  %v1583_v58 = vpop.permute.xlu0 %1582 }
 0x6fe   : > { %v1590_v21 = vmul.f32 %v1583_v58, %v1576_v0 }
 0x701   : > { %v1573_v62 = vpop.permute.xlu1 %1572 }
 0x702   : > { %v1577_v2 = vadd.f32 %v1573_v62, %v1539_v57 }
 0x704   : > { %v1591_v4 = vmul.f32 %v1588_v46, %v1577_v2  ;;  %v2240_v46 = vld [vmem:[%s2419_s28] sm:$0xff]  }
 0x706   : > { %v1592_v27 = vcombine.low %v1590_v21, %v1591_v4 }
 0x708   : > { %v1599_v39 = vrot.slane %v1592_v27, %v2497_v28 }
 0x70a   : > { %v1600_v8 = vcombine.high %v1599_v39, %v2281_v5 }
 0x70c   : > { %v1608_v32 = vrot.slane %v1600_v8, %v2532_v63 }
 0x70e   : > { %1609 = vrot.lane.b32.xlu0 %v1608_v32, %s2289_s30 }
 0x72a   : > { %v1101_v9 = vpop.xlane.xlu0 %1100 }
 0x72b   : > { %v1105_v38 = vadd.f32 %v2260_v50, %v1101_v9 }
 0x72d   : > { %2263 = vrcp.f32 %v1105_v38 }
 0x72e   : > { %v1283_v3 = vpop.permute.xlu0 %1282 }
 0x72f   : > { %v1288_v17 = vadd.f32 %v1283_v3, %v1228_v60 }
 0x733   : > { %v1104_v10 = vpop.xlane.xlu1 %1103 }
 0x734   : > { %v1106_v11 = vadd.f32 %v2262_v19, %v1104_v10 }
 0x736   : > { %2265 = vrcp.f32 %v1106_v11 }
 0x737   : > { %v1285_v12 = vpop.permute.xlu1 %1284 }
 0x738   : > { %v1289_v18 = vadd.f32 %v1285_v12, %v1229_v13 }
 0x73a   : > { %v2264_v52 = vpop.eup %2263 }
 0x73b   : > { %v1292_v23 = vmul.f32 %v2264_v52, %v1288_v17 }
 0x743   : > { %v2266_v22 = vpop.eup %2265 }
 0x744   : > { %v1293_v24 = vmul.f32 %v2266_v22, %v1289_v18 }
 0x746   : > { %v1294_v25 = vcombine.low %v1292_v23, %v1293_v24 }
 0x748   : > { %v1301_v55 = vrot.slane %v1294_v25, %v2497_v28 }
 0x74a   : > { %v1302_v59 = vcombine.high %v1301_v55, %v2281_v5 }
 0x74c   : > { %v1310_v26 = vrot.slane %v1302_v59, %v2532_v63 }
 0x74e   : > { %1311 = vrot.lane.b32.xlu1 %v1310_v26, %s2289_s30 }
 0x780   : > { %v1610_v30 = vpop.permute.xlu0 %1609 }
 0x781   : > { %v1612_v31 = vsel %vm858_vm5, %v1599_v39, %v1610_v30 }
 0x782   : > { %1614 = vrot.lane.b32.xlu0 %v1612_v31, %s2296_s0 }
 0x7c0   : > { %v1312_v33 = vpop.permute.xlu1 %1311 }
 0x7c1   : > { %v1314_v35 = vsel %vm858_vm5, %v1301_v55, %v1312_v33 }
 0x7f4   : > { %v1615_v28 = vpop.permute.xlu0 %1614 }
 0x7f5   : > { %v1617_v36 = vsel %vm1177_vm10, %v1314_v35, %v1615_v28 }
 0x7f6   : > { %v1618_v15 = vpack.c.bf16 %v1617_v36, %v1617_v36 }
 0x7f8   : > { %2178 = vmatmul.mubr.msk.bf16.vlgmr.msra.gmra.mxu1 %vm668_vm3, %v1618_v15 }
 0x7f9   : > { %2193 = vmatprep.mubr.msk.bf16.mxu1 %vm2282_vm2, %v2281_v5  ;;  %2182 = vmatpush3.bf16.msra.mxu1 %v2235_v56 }
 0x7fa   : > { %2183 = vmatprep.subr.bf16.mxu1 %v2281_v5 }
 0x7fd   : > { %2184 = vmatpush3.bf16.msra.mxu1 %v2236_v45 }
 0x7fe   : > { %2185 = vmatprep.subr.bf16.mxu1 %v2281_v5 }
 0x801   : > { %2186 = vmatpush3.bf16.msra.mxu1 %v2237_v7 }
 0x802   : > { %2187 = vmatprep.subr.bf16.mxu1 %v2281_v5 }
 0x805   : > { %2188 = vmatpush3.bf16.msra.mxu1 %v2238_v34 }
 0x806   : > { %2189 = vmatprep.subr.bf16.mxu1 %v2281_v5 }
 0x809   : > { %2190 = vmatpush3.bf16.msra.mxu1 %v2239_v41 }
 0x80a   : > { %2191 = vmatprep.subr.bf16.mxu1 %v2281_v5 }
 0x80d   : > { %2192 = vmatpush3.bf16.msra.mxu1 %v2240_v46 }
 0x8b8   : > { %v1672_v63 = vpop.f32.mrf.mxu1 }
 0x8b9   : > { %v2747_v37 = vadd.f32 %v1672_v63, %v2450_v1 }
 0x8ba   : > { %v2179_v40 = vpop.f32.mrf.mxu1 }
 0x8bb   : > { %v1680_v42 = vmul.f32 %v2747_v37, %v2747_v37 }
 0x8bc   : > { %v1675_v43 = vpop.f32.mrf.mxu1 }
 0x8bd   : > { %v1681_v44 = vsel %vm635_vm1, %v1680_v42, 0.0 }
 0x8be   : > { %1682 = vadd.xlane.f32.xlu1 %v1681_v44  ;;  %v2180_v16 = vpop.f32.mrf.mxu1 }
 0x947   : > { %v1683_v1 = vpop.xlane.xlu1 %1682 }
 0x948   : > { %v1684_v49 = vmul.f32 0.03125, %v1683_v1 }
 0x94a   : > { %v1685_v50 = vadd.f32 1e-05, %v1684_v49 }
 0x94c   : > { %2267 = vrsqrt.f32 %v1685_v50 }
 0x959   : > { %v2268_v53 = vpop.eup %2267 }
 0x95a   : > { %v1687_v6 = vmul.f32 %v2268_v53, %v2747_v37 }
 0x95c   : > { %v1694_v19 = vmul.f32 %v2101_v54, %v1687_v6 }
 0x95e   : > { %v1695_v29 = vpack.c.bf16 %v1694_v19, %v1694_v19 }
 0x960   : > { %2106 = vmatmul.mubr.msk.bf16.vlgmr.msra.gmra.mxu0 %vm668_vm3, %v1695_v29 }
 0xa20   : > { %v1757_v57 = vpop.f32.mrf.mxu0 }
 0xa21   : > { %1773 = vrot.lane.b32.xlu0 %v1757_v57, %s2297_s2  ;;  %v2107_v2 = vmul.f32 -1.442695, %v1757_v57 }
 0xa22   : > { %v1759_v58 = vpop.f32.mrf.mxu0 }
 0xa23   : > { %2269 = vpow2.f32 %v2107_v2 }
 0xa24   : > { %v1761_v62 = vpop.f32.mrf.mxu0 }
 0xa25   : > { %1775 = vrot.lane.b32.xlu0 %v1759_v58, %s2297_s2 }
 0xa26   : > { %v1762_v0 = vpop.f32.mrf.mxu0 }
 0xa30   : > { %v2270_v21 = vpop.eup %2269 }
 0xa31   : > { %v1767_v4 = vadd.f32 1.0, %v2270_v21 }
 0xa33   : > { %2271 = vrcp.f32 %v1767_v4 }
 0xa40   : > { %v2272_v39 = vpop.eup %2271 }
 0xa41   : > { %v1770_v8 = vmul.f32 %v2272_v39, %v1757_v57 }
 0xa93   : > { %v1774_v27 = vpop.permute.xlu0 %1773 }
 0xa97   : > { %v1776_v32 = vpop.permute.xlu0 %1775 }
 0xa98   : > { %v1777_v5 = vsel %vm668_vm3, %v1774_v27, %v1776_v32 }
 0xa99   : > { %v1779_v9 = vmul.f32 %v1777_v5, %v1770_v8 }
 0xa9b   : > { %v1780_v38 = vpack.c.bf16 %v1779_v9, %v1779_v9 }
 0xa9d   : > { %2194 = vmatmul.mubr.msk.bf16.vlgmr.msra.gmra.mxu1 %vm1829_vm11, %v1780_v38 }
 0xb5d   : > { %v1867_v10 = vpop.f32.mrf.mxu1 }
 0xb5e   : > { %v1873_v11 = vadd.f32 %v1867_v10, %v2747_v37 }
 0xb5f   : > { %v2195_v60 = vpop.f32.mrf.mxu1 }
 0xb60   : > { %1874 = vst.msk [vmem:[%s2796_s13] sm:$0x3] %vm635_vm1, %v1873_v11 }
 0xb61   : > { %v1870_v3 = vpop.f32.mrf.mxu1 }
 0xb63   : > { %v2196_v12 = vpop.f32.mrf.mxu1 }
 0xb64 PF: > { %s2813_s29 = sld [smem:[#allocation4_spill]] }
 0xb6a   : > { %s27_s20 = sadd.s32 1, %s2813_s29  }
 0xb6b   : > { %p24_p6 = scmp.ge.s32.totalorder %s27_s20, 4  }
 0xb6d   :  { %26 = sbr.rel (!%p24_p6) target bundleno = 7 (0x7), region = 143 }

</bundles_post_ra>
